<compile_context>
chip_gen: v7x
topology: tpu7x:2x2x1
jax: 0.10.0
libtpu: 0.0.40
codegen_flags: <defaults>
</compile_context>

<pallas_src>
import jax
import jax.numpy as jnp
from jax.experimental import pallas as pl
from jax.experimental.pallas import tpu as pltpu

EPS = 1e-8          # matches torch cosine_similarity default eps
NEG_MASK = -1e30    # finite large-negative padding bias (instead of -inf)


def _mask_predictor_kernel(
    txt_ref,   # (bt*L_pad, d)  text features for this batch tile (compute dtype)
    img_ref,   # (bt, Nt, d)    image-feature N tile (compute dtype)
    neg_ref,   # (bt, Nt)       additive padding bias, f32 (0 valid / -1e30 padded)
    wq_ref,    # (d, d)         query_proj weight, x @ W layout (compute dtype)
    bq_ref,    # (1, d)         f32
    wk_ref,    # (d, d)         key_proj weight, x @ W layout (compute dtype)
    bk_ref,    # (1, d)         f32
    w1_ref,    # (16,)  SMEM    mask_generator Linear(1,16).weight, f32
    b1_ref,    # (16,)  SMEM
    w2_ref,    # (16,)  SMEM    mask_generator Linear(16,1).weight, f32
    b2_ref,    # (1,)   SMEM
    out_ref,   # (bt*L_pad, 1)  continuous mask, f32
    qh_ref,    # scratch (bt*L_pad, d): cosine-normalized queries (compute dtype)
    mx_ref,    # scratch (bt*L_pad, 1): running masked max over N tiles, f32
):
    f32 = jnp.float32
    bt = img_ref.shape[0]
    L_pad = qh_ref.shape[0] // bt
    nk = pl.program_id(1)

    # --- once per batch tile: project + cosine-normalize the queries ---------
    @pl.when(nk == 0)
    def _():
        q = jnp.dot(txt_ref[...], wq_ref[...],
                    preferred_element_type=f32) + bq_ref[...]          # (bt*L, d) f32
        inv_q = jax.lax.rsqrt(
            jnp.maximum(jnp.sum(q * q, axis=-1, keepdims=True), EPS * EPS))
        qh_ref[...] = (q * inv_q).astype(qh_ref.dtype)
        mx_ref[...] = jnp.full(mx_ref.shape, -jnp.inf, dtype=mx_ref.dtype)

    dn = (((1,), (1,)), ((), ()))   # contract last dims of both operands (no k transpose)

    # --- per batch element: project keys for THIS N tile only ----------------
    for i in range(bt):
        k_i = jnp.dot(img_ref[i], wk_ref[...],
                      preferred_element_type=f32) + bk_ref[...]        # (Nt, d) f32
        inv_k = jax.lax.rsqrt(
            jnp.maximum(jnp.sum(k_i * k_i, axis=-1, keepdims=True), EPS * EPS))
        kh_i = (k_i * inv_k).astype(img_ref.dtype)                     # (Nt, d) bf16

        q_i = qh_ref[i * L_pad:(i + 1) * L_pad, :]                     # (L_pad, d)
        s_i = jax.lax.dot_general(q_i, kh_i, dn,
                                  preferred_element_type=f32)          # (L_pad, Nt)
        s_i = s_i + neg_ref[i:i + 1, :]                                # (1, Nt) bias bcast
        m_i = jnp.max(s_i, axis=-1, keepdims=True)                     # (L_pad, 1)

        sl = slice(i * L_pad, (i + 1) * L_pad)
        mx_ref[sl, :] = jnp.maximum(mx_ref[sl, :], m_i)

    # --- finalize: tiny MLP (1->16->1) + sigmoid, unrolled scalar x vector ----
    @pl.when(nk == pl.num_programs(1) - 1)
    def _():
        mx = mx_ref[...]                                               # (bt*L_pad, 1) f32
        o = jnp.zeros_like(mx) + b2_ref[0]
        for j in range(w1_ref.shape[0]):
            o = o + jnp.maximum(mx * w1_ref[j] + b1_ref[j], 0.0) * w2_ref[j]
        out_ref[...] = jax.nn.sigmoid(o)


def _round_up(x, m):
    return ((x + m - 1) // m) * m


def _tensorcores_per_chip():
    # v7x exposes 2 TensorCores that shard the "parallel" grid axis; v5e/v6e have 1
    # (there, extra grid steps are pure per-step overhead).
    try:
        kind = jax.devices()[0].device_kind.lower()
    except Exception:
        return 1
    return 2 if "v7" in kind else 1


def _choose_tiles(b, L_pad, N, d, itemsize, num_tc, budget_bytes):
    """Pick (batch tile bt, #batch steps, N tile Nt) from a VMEM budget."""
    bt_cap = 8                                  # static per-element unroll in the kernel
    if num_tc >= 2 and b > 1:
        steps = 2                               # even step count keeps both TCs busy
        while -(-b // steps) > bt_cap:
            steps += 2
        bt = -(-b // steps)
    else:
        bt = min(b, bt_cap)                     # single TC: fewest / largest steps
        steps = -(-b // bt)

    def vmem_usage(nt):
        img_blk = 2 * bt * nt * d * itemsize    # double-buffered bf16 image tile
        neg_blk = 2 * bt * nt * 4               # double-buffered lane-dense f32 bias
        txt_blk = 2 * bt * L_pad * d * itemsize
        k_tmp = 2 * nt * d * (4 + itemsize)     # f32 key proj + bf16 kh (x2 headroom)
        scores = 2 * L_pad * nt * 4             # f32 (L_pad, Nt) scores (x2 headroom)
        qh = bt * L_pad * d * itemsize
        weights = 2 * d * d * itemsize + 2 * d * 4
        return img_blk + neg_blk + txt_blk + k_tmp + scores + qh + weights

    nt = _round_up(N, 128)                      # lane-dense N tile, multiple of 128
    while nt > 128 and vmem_usage(nt) > budget_bytes:
        nt = _round_up(-(-nt // 2), 128)
    return bt, steps, nt


def mask_predictor_forward(image_features, text_features, image_padding_mask, params,
                           *, compute_dtype=jnp.bfloat16,
                           vmem_budget_bytes=16 * 1024 * 1024):
    """image_features: (b, h, w, d) channels-last;  text_features: (b, L, d);
       image_padding_mask: (b, h, w) bool (True = padded).  Returns (b, L) f32.
       params = (wq, bq, wk, bk, w1, b1, w2, b2), wq/wk in x @ W layout
       (i.e. the transpose of torch Linear.weight)."""
    b, h, w, d = image_features.shape
    L = text_features.shape[1]
    N = h * w
    wq, bq, wk, bk, w1, b1, w2, b2 = params

    itemsize = jnp.dtype(compute_dtype).itemsize
    L_pad = _round_up(max(L, 8), 8)             # keeps per-element slices (8,128)-aligned
    num_tc = _tensorcores_per_chip()
    bt, steps, Nt = _choose_tiles(b, L_pad, N, d, itemsize, num_tc, vmem_budget_bytes)
    b_pad = steps * bt
    N_pad = _round_up(N, Nt)
    n_tiles = N_pad // Nt

    # text: (steps, bt*L_pad, d), bf16
    txt = jnp.pad(text_features.astype(compute_dtype),
                  ((0, b_pad - b), (0, L_pad - L), (0, 0)))
    txt3 = txt.reshape(steps, bt * L_pad, d)

    # image: (steps, bt, N_pad, d), bf16  (halves the HBM->VMEM image stream)
    img = jnp.pad(image_features.reshape(b, N, d).astype(compute_dtype),
                  ((0, b_pad - b), (0, N_pad - N), (0, 0)))
    img4 = img.reshape(steps, bt, N_pad, d)

    # lane-dense additive padding bias: 0 valid, -1e30 padded (N padding masked too)
    neg = jnp.where(image_padding_mask.reshape(b, N), NEG_MASK, 0.0).astype(jnp.float32)
    neg = jnp.pad(neg, ((0, b_pad - b), (0, N_pad - N)), constant_values=NEG_MASK)
    neg3 = neg.reshape(steps, bt, N_pad)

    wq_c = wq.astype(compute_dtype)
    wk_c = wk.astype(compute_dtype)
    bq2 = bq.reshape(1, d).astype(jnp.float32)
    bk2 = bk.reshape(1, d).astype(jnp.float32)
    w1v = w1.reshape(16).astype(jnp.float32)
    b1v = b1.reshape(16).astype(jnp.float32)
    w2v = w2.reshape(16).astype(jnp.float32)
    b2v = b2.reshape(1).astype(jnp.float32)

    vmem_full = lambda a: pl.BlockSpec(a.shape, lambda bi, nk: (0,) * a.ndim)
    smem = pl.BlockSpec(memory_space=pltpu.MemorySpace.SMEM)

    out = pl.pallas_call(
        _mask_predictor_kernel,
        out_shape=jax.ShapeDtypeStruct((steps, bt * L_pad, 1), jnp.float32),
        grid=(steps, n_tiles),
        in_specs=[
            pl.BlockSpec((None, bt * L_pad, d), lambda bi, nk: (bi, 0, 0)),   # text tile
            pl.BlockSpec((None, bt, Nt, d), lambda bi, nk: (bi, 0, nk, 0)),   # image N tile
            pl.BlockSpec((None, bt, Nt), lambda bi, nk: (bi, 0, nk)),         # padding bias
            vmem_full(wq_c), vmem_full(bq2),
            vmem_full(wk_c), vmem_full(bk2),
            smem, smem, smem, smem,                                           # tiny MLP params
        ],
        out_specs=pl.BlockSpec((None, bt * L_pad, 1), lambda bi, nk: (bi, 0, 0)),
        scratch_shapes=[
            pltpu.VMEM((bt * L_pad, d), compute_dtype),   # cached normalized queries
            pltpu.VMEM((bt * L_pad, 1), jnp.float32),     # running masked max
        ],
        compiler_params=pltpu.CompilerParams(
            dimension_semantics=("parallel", "arbitrary"),
            vmem_limit_bytes=32 * 1024 * 1024,
        ),
    )(txt3, img4, neg3, wq_c, bq2, wk_c, bk2, w1v, b1v, w2v, b2v)

    return out.reshape(b_pad, L_pad)[:b, :L]


def make_params(key, d_model, hidden=16):
    ks = jax.random.split(key, 8)
    s = 0.1
    wq = jax.random.normal(ks[0], (d_model, d_model), jnp.float32) * s   # x @ W layout
    bq = jax.random.normal(ks[1], (d_model,), jnp.float32) * s
    wk = jax.random.normal(ks[2], (d_model, d_model), jnp.float32) * s
    bk = jax.random.normal(ks[3], (d_model,), jnp.float32) * s
    w1 = jax.random.normal(ks[4], (hidden,), jnp.float32) * s            # Linear(1,16).weight
    b1 = jax.random.normal(ks[5], (hidden,), jnp.float32) * s
    w2 = jax.random.normal(ks[6], (hidden,), jnp.float32) * s            # Linear(16,1).weight
    b2 = jax.random.normal(ks[7], (1,), jnp.float32) * s
    return (wq, bq, wk, bk, w1, b1, w2, b2)


def reference_forward(image_features, text_features, image_padding_mask, params,
                      *, compute_dtype=jnp.bfloat16):
    """Pure-JAX reference with the module's masked_fill(-inf) semantics and the
       same mixed precision as the kernel."""
    wq, bq, wk, bk, w1, b1, w2, b2 = params
    b, h, w, d = image_features.shape
    N = h * w
    txt = text_features.astype(compute_dtype)
    img = image_features.reshape(b, N, d).astype(compute_dtype)

    q = jnp.einsum("bld,de->ble", txt, wq.astype(compute_dtype),
                   preferred_element_type=jnp.float32) + bq
    k = jnp.einsum("bnd,de->bne", img, wk.astype(compute_dtype),
                   preferred_element_type=jnp.float32) + bk
    inv_q = jax.lax.rsqrt(jnp.maximum(jnp.sum(q * q, -1, keepdims=True), EPS * EPS))
    inv_k = jax.lax.rsqrt(jnp.maximum(jnp.sum(k * k, -1, keepdims=True), EPS * EPS))
    qh = (q * inv_q).astype(compute_dtype)
    kh = (k * inv_k).astype(compute_dtype)

    scores = jnp.einsum("bld,bnd->bln", qh, kh, preferred_element_type=jnp.float32)
    scores = jnp.where(image_padding_mask.reshape(b, 1, N), -jnp.inf, scores)
    mx = jnp.max(scores, axis=-1)                               # (b, L)

    hid = jnp.maximum(mx[..., None] * w1 + b1, 0.0)             # (b, L, 16)
    o = hid @ w2 + b2[0]                                        # (b, L)
    return jax.nn.sigmoid(o)


if __name__ == "__main__":
    key = jax.random.PRNGKey(0)
    k_img, k_txt, k_msk, k_par = jax.random.split(key, 4)

    b, h, w, d_model, L = 2, 16, 16, 32, 8

    image_features = jax.random.normal(k_img, (b, h, w, d_model), jnp.float32)
    text_features = jax.random.normal(k_txt, (b, L, d_model), jnp.float32)
    image_padding_mask = jax.random.bernoulli(k_msk, 0.2, (b, h, w))
    # Guarantee at least one valid position per image so the finite -1e30 bias
    # matches torch's masked_fill(-inf) + max semantics exactly.
    image_padding_mask = image_padding_mask.at[:, 0, 0].set(False)

    params = make_params(k_par, d_model)

    out = mask_predictor_forward(image_features, text_features,
                                 image_padding_mask, params)
    out = jax.block_until_ready(out)

    ref = reference_forward(image_features, text_features,
                            image_padding_mask, params)
    assert out.shape == (b, L), out.shape
    assert jnp.allclose(out, ref, atol=2e-3, rtol=2e-3), (out, ref)

    print("KERNEL_OK")
</pallas_src>

<mosaic_0001>
module attributes {stable_mosaic.version = 11 : i64} {
  func.func @_mask_predictor_kernel(%arg0: i32, %arg1: i32, %arg2: memref<1x16x32xbf16, #tpu.memory_space<vmem>>, %arg3: memref<1x2x256x32xbf16, #tpu.memory_space<vmem>>, %arg4: memref<1x2x256xf32, #tpu.memory_space<vmem>>, %arg5: memref<32x32xbf16, #tpu.memory_space<vmem>>, %arg6: memref<1x32xf32, #tpu.memory_space<vmem>>, %arg7: memref<32x32xbf16, #tpu.memory_space<vmem>>, %arg8: memref<1x32xf32, #tpu.memory_space<vmem>>, %arg9: memref<16xf32, #tpu.memory_space<smem>>, %arg10: memref<16xf32, #tpu.memory_space<smem>>, %arg11: memref<16xf32, #tpu.memory_space<smem>>, %arg12: memref<1xf32, #tpu.memory_space<smem>>, %arg13: memref<1x16x1xf32, #tpu.memory_space<vmem>>, %arg14: memref<16x32xbf16, #tpu.memory_space<vmem>>, %arg15: memref<16x1xf32, #tpu.memory_space<vmem>>) attributes {dimension_semantics = [#tpu.dimension_semantics<parallel>, #tpu.dimension_semantics<arbitrary>], iteration_bounds = array<i64: 1, 1>, scalar_prefetch = 0 : i64, scratch_operands = 2 : i64, tpu.core_type = #tpu.core_type<tc>, window_params = [{transform_indices = @transform_0, window_bounds = array<i64: 1, 16, 32>}, {transform_indices = @transform_1, window_bounds = array<i64: 1, 2, 256, 32>}, {transform_indices = @transform_2, window_bounds = array<i64: 1, 2, 256>}, {pipeline_mode = #tpu.pipeline_mode<synchronous>, transform_indices = @transform_3, window_bounds = array<i64: 32, 32>}, {pipeline_mode = #tpu.pipeline_mode<synchronous>, transform_indices = @transform_4, window_bounds = array<i64: 1, 32>}, {pipeline_mode = #tpu.pipeline_mode<synchronous>, transform_indices = @transform_5, window_bounds = array<i64: 32, 32>}, {pipeline_mode = #tpu.pipeline_mode<synchronous>, transform_indices = @transform_6, window_bounds = array<i64: 1, 32>}, {transform_indices = @transform_7, window_bounds = array<i64: 16>}, {transform_indices = @transform_8, window_bounds = array<i64: 16>}, {transform_indices = @transform_9, window_bounds = array<i64: 16>}, {transform_indices = @transform_10, window_bounds = array<i64: 1>}, {transform_indices = @transform_11, window_bounds = array<i64: 1, 16, 1>}]} {
    %c0_i32 = arith.constant 0 : i32
    %0 = arith.cmpi eq, %arg1, %c0_i32 : i32
    %1 = arith.extui %0 : i1 to i32
    %c0_i32_0 = arith.constant 0 : i32
    %2 = arith.cmpi ne, %1, %c0_i32_0 : i32
    scf.if %2 {
      %c0_43 = arith.constant 0 : index
      %c0_44 = arith.constant 0 : index
      %c0_45 = arith.constant 0 : index
      %60 = vector.load %arg2[%c0_43, %c0_44, %c0_45] : memref<1x16x32xbf16, #tpu.memory_space<vmem>>, vector<1x16x32xbf16>
      %61 = vector.shape_cast %60 : vector<1x16x32xbf16> to vector<16x32xbf16>
      %c0_46 = arith.constant 0 : index
      %c0_47 = arith.constant 0 : index
      %62 = vector.load %arg5[%c0_46, %c0_47] : memref<32x32xbf16, #tpu.memory_space<vmem>>, vector<32x32xbf16>
      %cst_48 = arith.constant dense<0.000000e+00> : vector<16x32xf32>
      %63 = tpu.matmul %61, %62, %cst_48 {dimension_numbers = #tpu.dot_dimension_numbers<[1], [0], [0], [1], [0, 0, 1, 1], [], []>} : vector<16x32xbf16>, vector<32x32xbf16>, vector<16x32xf32> -> vector<16x32xf32>
      %c0_49 = arith.constant 0 : index
      %c0_50 = arith.constant 0 : index
      %64 = vector.load %arg6[%c0_49, %c0_50] : memref<1x32xf32, #tpu.memory_space<vmem>>, vector<1x32xf32>
      %65 = vector.broadcast %64 : vector<1x32xf32> to vector<16x32xf32>
      %66 = arith.addf %63, %65 : vector<16x32xf32>
      %67 = arith.mulf %66, %66 : vector<16x32xf32>
      %cst_51 = arith.constant dense<0.000000e+00> : vector<16xf32>
      %68 = vector.multi_reduction <add>, %67, %cst_51 [1] : vector<16x32xf32> to vector<16xf32>
      %69 = vector.shape_cast %68 : vector<16xf32> to vector<16x1xf32>
      %cst_52 = arith.constant 1.000000e-16 : f32
      %70 = vector.broadcast %cst_52 : f32 to vector<16x1xf32>
      %71 = arith.maximumf %69, %70 : vector<16x1xf32>
      %72 = math.rsqrt %71 : vector<16x1xf32>
      %73 = vector.broadcast %72 : vector<16x1xf32> to vector<16x32xf32>
      %74 = arith.mulf %66, %73 : vector<16x32xf32>
      %75 = arith.truncf %74 : vector<16x32xf32> to vector<16x32xbf16>
      %c0_53 = arith.constant 0 : index
      %c0_54 = arith.constant 0 : index
      %76 = vector.load %arg14[%c0_53, %c0_54] : memref<16x32xbf16, #tpu.memory_space<vmem>>, vector<16x32xbf16>
      tpu.vector_store %arg14[%c0_53, %c0_54], %75 {strides = array<i32>} : memref<16x32xbf16, #tpu.memory_space<vmem>>, vector<16x32xbf16>,
      %cst_55 = arith.constant 0xFF800000 : f32
      %77 = vector.broadcast %cst_55 : f32 to vector<16x1xf32>
      %c0_56 = arith.constant 0 : index
      %c0_57 = arith.constant 0 : index
      %78 = vector.load %arg15[%c0_56, %c0_57] : memref<16x1xf32, #tpu.memory_space<vmem>>, vector<16x1xf32>
      tpu.vector_store %arg15[%c0_56, %c0_57], %77 {strides = array<i32>} : memref<16x1xf32, #tpu.memory_space<vmem>>, vector<16x1xf32>,
    } else {
    }
    %c0 = arith.constant 0 : index
    %c0_1 = arith.constant 0 : index
    %c0_2 = arith.constant 0 : index
    %c0_3 = arith.constant 0 : index
    %3 = vector.load %arg3[%c0, %c0_1, %c0_2, %c0_3] : memref<1x2x256x32xbf16, #tpu.memory_space<vmem>>, vector<1x1x256x32xbf16>
    %4 = vector.shape_cast %3 : vector<1x1x256x32xbf16> to vector<256x32xbf16>
    %c0_4 = arith.constant 0 : index
    %c0_5 = arith.constant 0 : index
    %5 = vector.load %arg7[%c0_4, %c0_5] : memref<32x32xbf16, #tpu.memory_space<vmem>>, vector<32x32xbf16>
    %cst = arith.constant dense<0.000000e+00> : vector<256x32xf32>
    %6 = tpu.matmul %4, %5, %cst {dimension_numbers = #tpu.dot_dimension_numbers<[1], [0], [0], [1], [0, 0, 1, 1], [], []>} : vector<256x32xbf16>, vector<32x32xbf16>, vector<256x32xf32> -> vector<256x32xf32>
    %c0_6 = arith.constant 0 : index
    %c0_7 = arith.constant 0 : index
    %7 = vector.load %arg8[%c0_6, %c0_7] : memref<1x32xf32, #tpu.memory_space<vmem>>, vector<1x32xf32>
    %8 = vector.broadcast %7 : vector<1x32xf32> to vector<256x32xf32>
    %9 = arith.addf %6, %8 : vector<256x32xf32>
    %10 = arith.mulf %9, %9 : vector<256x32xf32>
    %cst_8 = arith.constant dense<0.000000e+00> : vector<256xf32>
    %11 = vector.multi_reduction <add>, %10, %cst_8 [1] : vector<256x32xf32> to vector<256xf32>
    %12 = vector.shape_cast %11 : vector<256xf32> to vector<256x1xf32>
    %cst_9 = arith.constant 1.000000e-16 : f32
    %13 = vector.broadcast %cst_9 : f32 to vector<256x1xf32>
    %14 = arith.maximumf %12, %13 : vector<256x1xf32>
    %15 = math.rsqrt %14 : vector<256x1xf32>
    %16 = vector.broadcast %15 : vector<256x1xf32> to vector<256x32xf32>
    %17 = arith.mulf %9, %16 : vector<256x32xf32>
    %18 = arith.truncf %17 : vector<256x32xf32> to vector<256x32xbf16>
    %c0_10 = arith.constant 0 : index
    %c0_11 = arith.constant 0 : index
    %19 = vector.load %arg14[%c0_10, %c0_11] : memref<16x32xbf16, #tpu.memory_space<vmem>>, vector<8x32xbf16>
    %cst_12 = arith.constant dense<0.000000e+00> : vector<8x256xf32>
    %20 = tpu.matmul %19, %18, %cst_12 {dimension_numbers = #tpu.dot_dimension_numbers<[1], [1], [0], [0], [0, 0, 1, 0], [], []>} : vector<8x32xbf16>, vector<256x32xbf16>, vector<8x256xf32> -> vector<8x256xf32>
    %c0_13 = arith.constant 0 : index
    %c0_14 = arith.constant 0 : index
    %c0_15 = arith.constant 0 : index
    %21 = vector.load %arg4[%c0_13, %c0_14, %c0_15] : memref<1x2x256xf32, #tpu.memory_space<vmem>>, vector<1x1x256xf32>
    %22 = vector.shape_cast %21 : vector<1x1x256xf32> to vector<1x256xf32>
    %23 = vector.broadcast %22 : vector<1x256xf32> to vector<8x256xf32>
    %24 = arith.addf %20, %23 : vector<8x256xf32>
    %cst_16 = arith.constant dense<0xFF800000> : vector<8xf32>
    %25 = vector.multi_reduction <maximumf>, %24, %cst_16 [1] : vector<8x256xf32> to vector<8xf32>
    %26 = vector.shape_cast %25 : vector<8xf32> to vector<8x1xf32>
    %c0_17 = arith.constant 0 : index
    %c0_18 = arith.constant 0 : index
    %27 = vector.load %arg15[%c0_17, %c0_18] : memref<16x1xf32, #tpu.memory_space<vmem>>, vector<8x1xf32>
    %28 = arith.maximumf %27, %26 : vector<8x1xf32>
    %c0_19 = arith.constant 0 : index
    %c0_20 = arith.constant 0 : index
    %29 = vector.load %arg15[%c0_19, %c0_20] : memref<16x1xf32, #tpu.memory_space<vmem>>, vector<8x1xf32>
    tpu.vector_store %arg15[%c0_19, %c0_20], %28 {strides = array<i32>} : memref<16x1xf32, #tpu.memory_space<vmem>>, vector<8x1xf32>,
    %c0_21 = arith.constant 0 : index
    %c1 = arith.constant 1 : index
    %c0_22 = arith.constant 0 : index
    %c0_23 = arith.constant 0 : index
    %30 = vector.load %arg3[%c0_21, %c1, %c0_22, %c0_23] : memref<1x2x256x32xbf16, #tpu.memory_space<vmem>>, vector<1x1x256x32xbf16>
    %31 = vector.shape_cast %30 : vector<1x1x256x32xbf16> to vector<256x32xbf16>
    %c0_24 = arith.constant 0 : index
    %c0_25 = arith.constant 0 : index
    %32 = vector.load %arg7[%c0_24, %c0_25] : memref<32x32xbf16, #tpu.memory_space<vmem>>, vector<32x32xbf16>
    %cst_26 = arith.constant dense<0.000000e+00> : vector<256x32xf32>
    %33 = tpu.matmul %31, %32, %cst_26 {dimension_numbers = #tpu.dot_dimension_numbers<[1], [0], [0], [1], [0, 0, 1, 1], [], []>} : vector<256x32xbf16>, vector<32x32xbf16>, vector<256x32xf32> -> vector<256x32xf32>
    %c0_27 = arith.constant 0 : index
    %c0_28 = arith.constant 0 : index
    %34 = vector.load %arg8[%c0_27, %c0_28] : memref<1x32xf32, #tpu.memory_space<vmem>>, vector<1x32xf32>
    %35 = vector.broadcast %34 : vector<1x32xf32> to vector<256x32xf32>
    %36 = arith.addf %33, %35 : vector<256x32xf32>
    %37 = arith.mulf %36, %36 : vector<256x32xf32>
    %cst_29 = arith.constant dense<0.000000e+00> : vector<256xf32>
    %38 = vector.multi_reduction <add>, %37, %cst_29 [1] : vector<256x32xf32> to vector<256xf32>
    %39 = vector.shape_cast %38 : vector<256xf32> to vector<256x1xf32>
    %cst_30 = arith.constant 1.000000e-16 : f32
    %40 = vector.broadcast %cst_30 : f32 to vector<256x1xf32>
    %41 = arith.maximumf %39, %40 : vector<256x1xf32>
    %42 = math.rsqrt %41 : vector<256x1xf32>
    %43 = vector.broadcast %42 : vector<256x1xf32> to vector<256x32xf32>
    %44 = arith.mulf %36, %43 : vector<256x32xf32>
    %45 = arith.truncf %44 : vector<256x32xf32> to vector<256x32xbf16>
    %c8 = arith.constant 8 : index
    %c0_31 = arith.constant 0 : index
    %46 = vector.load %arg14[%c8, %c0_31] : memref<16x32xbf16, #tpu.memory_space<vmem>>, vector<8x32xbf16>
    %cst_32 = arith.constant dense<0.000000e+00> : vector<8x256xf32>
    %47 = tpu.matmul %46, %45, %cst_32 {dimension_numbers = #tpu.dot_dimension_numbers<[1], [1], [0], [0], [0, 0, 1, 0], [], []>} : vector<8x32xbf16>, vector<256x32xbf16>, vector<8x256xf32> -> vector<8x256xf32>
    %c0_33 = arith.constant 0 : index
    %c1_34 = arith.constant 1 : index
    %c0_35 = arith.constant 0 : index
    %48 = vector.load %arg4[%c0_33, %c1_34, %c0_35] : memref<1x2x256xf32, #tpu.memory_space<vmem>>, vector<1x1x256xf32>
    %49 = vector.shape_cast %48 : vector<1x1x256xf32> to vector<1x256xf32>
    %50 = vector.broadcast %49 : vector<1x256xf32> to vector<8x256xf32>
    %51 = arith.addf %47, %50 : vector<8x256xf32>
    %cst_36 = arith.constant dense<0xFF800000> : vector<8xf32>
    %52 = vector.multi_reduction <maximumf>, %51, %cst_36 [1] : vector<8x256xf32> to vector<8xf32>
    %53 = vector.shape_cast %52 : vector<8xf32> to vector<8x1xf32>
    %c8_37 = arith.constant 8 : index
    %c0_38 = arith.constant 0 : index
    %54 = vector.load %arg15[%c8_37, %c0_38] : memref<16x1xf32, #tpu.memory_space<vmem>>, vector<8x1xf32>
    %55 = arith.maximumf %54, %53 : vector<8x1xf32>
    %c8_39 = arith.constant 8 : index
    %c0_40 = arith.constant 0 : index
    %56 = vector.load %arg15[%c8_39, %c0_40] : memref<16x1xf32, #tpu.memory_space<vmem>>, vector<8x1xf32>
    tpu.vector_store %arg15[%c8_39, %c0_40], %55 {strides = array<i32>} : memref<16x1xf32, #tpu.memory_space<vmem>>, vector<8x1xf32>,
    %c0_i32_41 = arith.constant 0 : i32
    %57 = arith.cmpi eq, %arg1, %c0_i32_41 : i32
    %58 = arith.extui %57 : i1 to i32
    %c0_i32_42 = arith.constant 0 : i32
    %59 = arith.cmpi ne, %58, %c0_i32_42 : i32
    scf.if %59 {
      %c0_43 = arith.constant 0 : index
      %c0_44 = arith.constant 0 : index
      %60 = vector.load %arg15[%c0_43, %c0_44] : memref<16x1xf32, #tpu.memory_space<vmem>>, vector<16x1xf32>
      %cst_45 = arith.constant 0.000000e+00 : f32
      %61 = vector.broadcast %cst_45 : f32 to vector<16x1xf32>
      %c0_46 = arith.constant 0 : index
      %62 = memref.load %arg12[%c0_46] : memref<1xf32, #tpu.memory_space<smem>>
      %63 = vector.broadcast %62 : f32 to vector<16x1xf32>
      %64 = arith.addf %61, %63 : vector<16x1xf32>
      %c0_47 = arith.constant 0 : index
      %65 = memref.load %arg9[%c0_47] : memref<16xf32, #tpu.memory_space<smem>>
      %66 = vector.broadcast %65 : f32 to vector<16x1xf32>
      %67 = arith.mulf %60, %66 : vector<16x1xf32>
      %c0_48 = arith.constant 0 : index
      %68 = memref.load %arg10[%c0_48] : memref<16xf32, #tpu.memory_space<smem>>
      %69 = vector.broadcast %68 : f32 to vector<16x1xf32>
      %70 = arith.addf %67, %69 : vector<16x1xf32>
      %cst_49 = arith.constant 0.000000e+00 : f32
      %71 = vector.broadcast %cst_49 : f32 to vector<16x1xf32>
      %72 = arith.maximumf %70, %71 : vector<16x1xf32>
      %c0_50 = arith.constant 0 : index
      %73 = memref.load %arg11[%c0_50] : memref<16xf32, #tpu.memory_space<smem>>
      %74 = vector.broadcast %73 : f32 to vector<16x1xf32>
      %75 = arith.mulf %72, %74 : vector<16x1xf32>
      %76 = arith.addf %64, %75 : vector<16x1xf32>
      %c1_51 = arith.constant 1 : index
      %77 = memref.load %arg9[%c1_51] : memref<16xf32, #tpu.memory_space<smem>>
      %78 = vector.broadcast %77 : f32 to vector<16x1xf32>
      %79 = arith.mulf %60, %78 : vector<16x1xf32>
      %c1_52 = arith.constant 1 : index
      %80 = memref.load %arg10[%c1_52] : memref<16xf32, #tpu.memory_space<smem>>
      %81 = vector.broadcast %80 : f32 to vector<16x1xf32>
      %82 = arith.addf %79, %81 : vector<16x1xf32>
      %cst_53 = arith.constant 0.000000e+00 : f32
      %83 = vector.broadcast %cst_53 : f32 to vector<16x1xf32>
      %84 = arith.maximumf %82, %83 : vector<16x1xf32>
      %c1_54 = arith.constant 1 : index
      %85 = memref.load %arg11[%c1_54] : memref<16xf32, #tpu.memory_space<smem>>
      %86 = vector.broadcast %85 : f32 to vector<16x1xf32>
      %87 = arith.mulf %84, %86 : vector<16x1xf32>
      %88 = arith.addf %76, %87 : vector<16x1xf32>
      %c2 = arith.constant 2 : index
      %89 = memref.load %arg9[%c2] : memref<16xf32, #tpu.memory_space<smem>>
      %90 = vector.broadcast %89 : f32 to vector<16x1xf32>
      %91 = arith.mulf %60, %90 : vector<16x1xf32>
      %c2_55 = arith.constant 2 : index
      %92 = memref.load %arg10[%c2_55] : memref<16xf32, #tpu.memory_space<smem>>
      %93 = vector.broadcast %92 : f32 to vector<16x1xf32>
      %94 = arith.addf %91, %93 : vector<16x1xf32>
      %cst_56 = arith.constant 0.000000e+00 : f32
      %95 = vector.broadcast %cst_56 : f32 to vector<16x1xf32>
      %96 = arith.maximumf %94, %95 : vector<16x1xf32>
      %c2_57 = arith.constant 2 : index
      %97 = memref.load %arg11[%c2_57] : memref<16xf32, #tpu.memory_space<smem>>
      %98 = vector.broadcast %97 : f32 to vector<16x1xf32>
      %99 = arith.mulf %96, %98 : vector<16x1xf32>
      %100 = arith.addf %88, %99 : vector<16x1xf32>
      %c3 = arith.constant 3 : index
      %101 = memref.load %arg9[%c3] : memref<16xf32, #tpu.memory_space<smem>>
      %102 = vector.broadcast %101 : f32 to vector<16x1xf32>
      %103 = arith.mulf %60, %102 : vector<16x1xf32>
      %c3_58 = arith.constant 3 : index
      %104 = memref.load %arg10[%c3_58] : memref<16xf32, #tpu.memory_space<smem>>
      %105 = vector.broadcast %104 : f32 to vector<16x1xf32>
      %106 = arith.addf %103, %105 : vector<16x1xf32>
      %cst_59 = arith.constant 0.000000e+00 : f32
      %107 = vector.broadcast %cst_59 : f32 to vector<16x1xf32>
      %108 = arith.maximumf %106, %107 : vector<16x1xf32>
      %c3_60 = arith.constant 3 : index
      %109 = memref.load %arg11[%c3_60] : memref<16xf32, #tpu.memory_space<smem>>
      %110 = vector.broadcast %109 : f32 to vector<16x1xf32>
      %111 = arith.mulf %108, %110 : vector<16x1xf32>
      %112 = arith.addf %100, %111 : vector<16x1xf32>
      %c4 = arith.constant 4 : index
      %113 = memref.load %arg9[%c4] : memref<16xf32, #tpu.memory_space<smem>>
      %114 = vector.broadcast %113 : f32 to vector<16x1xf32>
      %115 = arith.mulf %60, %114 : vector<16x1xf32>
      %c4_61 = arith.constant 4 : index
      %116 = memref.load %arg10[%c4_61] : memref<16xf32, #tpu.memory_space<smem>>
      %117 = vector.broadcast %116 : f32 to vector<16x1xf32>
      %118 = arith.addf %115, %117 : vector<16x1xf32>
      %cst_62 = arith.constant 0.000000e+00 : f32
      %119 = vector.broadcast %cst_62 : f32 to vector<16x1xf32>
      %120 = arith.maximumf %118, %119 : vector<16x1xf32>
      %c4_63 = arith.constant 4 : index
      %121 = memref.load %arg11[%c4_63] : memref<16xf32, #tpu.memory_space<smem>>
      %122 = vector.broadcast %121 : f32 to vector<16x1xf32>
      %123 = arith.mulf %120, %122 : vector<16x1xf32>
      %124 = arith.addf %112, %123 : vector<16x1xf32>
      %c5 = arith.constant 5 : index
      %125 = memref.load %arg9[%c5] : memref<16xf32, #tpu.memory_space<smem>>
      %126 = vector.broadcast %125 : f32 to vector<16x1xf32>
      %127 = arith.mulf %60, %126 : vector<16x1xf32>
      %c5_64 = arith.constant 5 : index
      %128 = memref.load %arg10[%c5_64] : memref<16xf32, #tpu.memory_space<smem>>
      %129 = vector.broadcast %128 : f32 to vector<16x1xf32>
      %130 = arith.addf %127, %129 : vector<16x1xf32>
      %cst_65 = arith.constant 0.000000e+00 : f32
      %131 = vector.broadcast %cst_65 : f32 to vector<16x1xf32>
      %132 = arith.maximumf %130, %131 : vector<16x1xf32>
      %c5_66 = arith.constant 5 : index
      %133 = memref.load %arg11[%c5_66] : memref<16xf32, #tpu.memory_space<smem>>
      %134 = vector.broadcast %133 : f32 to vector<16x1xf32>
      %135 = arith.mulf %132, %134 : vector<16x1xf32>
      %136 = arith.addf %124, %135 : vector<16x1xf32>
      %c6 = arith.constant 6 : index
      %137 = memref.load %arg9[%c6] : memref<16xf32, #tpu.memory_space<smem>>
      %138 = vector.broadcast %137 : f32 to vector<16x1xf32>
      %139 = arith.mulf %60, %138 : vector<16x1xf32>
      %c6_67 = arith.constant 6 : index
      %140 = memref.load %arg10[%c6_67] : memref<16xf32, #tpu.memory_space<smem>>
      %141 = vector.broadcast %140 : f32 to vector<16x1xf32>
      %142 = arith.addf %139, %141 : vector<16x1xf32>
      %cst_68 = arith.constant 0.000000e+00 : f32
      %143 = vector.broadcast %cst_68 : f32 to vector<16x1xf32>
      %144 = arith.maximumf %142, %143 : vector<16x1xf32>
      %c6_69 = arith.constant 6 : index
      %145 = memref.load %arg11[%c6_69] : memref<16xf32, #tpu.memory_space<smem>>
      %146 = vector.broadcast %145 : f32 to vector<16x1xf32>
      %147 = arith.mulf %144, %146 : vector<16x1xf32>
      %148 = arith.addf %136, %147 : vector<16x1xf32>
      %c7 = arith.constant 7 : index
      %149 = memref.load %arg9[%c7] : memref<16xf32, #tpu.memory_space<smem>>
      %150 = vector.broadcast %149 : f32 to vector<16x1xf32>
      %151 = arith.mulf %60, %150 : vector<16x1xf32>
      %c7_70 = arith.constant 7 : index
      %152 = memref.load %arg10[%c7_70] : memref<16xf32, #tpu.memory_space<smem>>
      %153 = vector.broadcast %152 : f32 to vector<16x1xf32>
      %154 = arith.addf %151, %153 : vector<16x1xf32>
      %cst_71 = arith.constant 0.000000e+00 : f32
      %155 = vector.broadcast %cst_71 : f32 to vector<16x1xf32>
      %156 = arith.maximumf %154, %155 : vector<16x1xf32>
      %c7_72 = arith.constant 7 : index
      %157 = memref.load %arg11[%c7_72] : memref<16xf32, #tpu.memory_space<smem>>
      %158 = vector.broadcast %157 : f32 to vector<16x1xf32>
      %159 = arith.mulf %156, %158 : vector<16x1xf32>
      %160 = arith.addf %148, %159 : vector<16x1xf32>
      %c8_73 = arith.constant 8 : index
      %161 = memref.load %arg9[%c8_73] : memref<16xf32, #tpu.memory_space<smem>>
      %162 = vector.broadcast %161 : f32 to vector<16x1xf32>
      %163 = arith.mulf %60, %162 : vector<16x1xf32>
      %c8_74 = arith.constant 8 : index
      %164 = memref.load %arg10[%c8_74] : memref<16xf32, #tpu.memory_space<smem>>
      %165 = vector.broadcast %164 : f32 to vector<16x1xf32>
      %166 = arith.addf %163, %165 : vector<16x1xf32>
      %cst_75 = arith.constant 0.000000e+00 : f32
      %167 = vector.broadcast %cst_75 : f32 to vector<16x1xf32>
      %168 = arith.maximumf %166, %167 : vector<16x1xf32>
      %c8_76 = arith.constant 8 : index
      %169 = memref.load %arg11[%c8_76] : memref<16xf32, #tpu.memory_space<smem>>
      %170 = vector.broadcast %169 : f32 to vector<16x1xf32>
      %171 = arith.mulf %168, %170 : vector<16x1xf32>
      %172 = arith.addf %160, %171 : vector<16x1xf32>
      %c9 = arith.constant 9 : index
      %173 = memref.load %arg9[%c9] : memref<16xf32, #tpu.memory_space<smem>>
      %174 = vector.broadcast %173 : f32 to vector<16x1xf32>
      %175 = arith.mulf %60, %174 : vector<16x1xf32>
      %c9_77 = arith.constant 9 : index
      %176 = memref.load %arg10[%c9_77] : memref<16xf32, #tpu.memory_space<smem>>
      %177 = vector.broadcast %176 : f32 to vector<16x1xf32>
      %178 = arith.addf %175, %177 : vector<16x1xf32>
      %cst_78 = arith.constant 0.000000e+00 : f32
      %179 = vector.broadcast %cst_78 : f32 to vector<16x1xf32>
      %180 = arith.maximumf %178, %179 : vector<16x1xf32>
      %c9_79 = arith.constant 9 : index
      %181 = memref.load %arg11[%c9_79] : memref<16xf32, #tpu.memory_space<smem>>
      %182 = vector.broadcast %181 : f32 to vector<16x1xf32>
      %183 = arith.mulf %180, %182 : vector<16x1xf32>
      %184 = arith.addf %172, %183 : vector<16x1xf32>
      %c10 = arith.constant 10 : index
      %185 = memref.load %arg9[%c10] : memref<16xf32, #tpu.memory_space<smem>>
      %186 = vector.broadcast %185 : f32 to vector<16x1xf32>
      %187 = arith.mulf %60, %186 : vector<16x1xf32>
      %c10_80 = arith.constant 10 : index
      %188 = memref.load %arg10[%c10_80] : memref<16xf32, #tpu.memory_space<smem>>
      %189 = vector.broadcast %188 : f32 to vector<16x1xf32>
      %190 = arith.addf %187, %189 : vector<16x1xf32>
      %cst_81 = arith.constant 0.000000e+00 : f32
      %191 = vector.broadcast %cst_81 : f32 to vector<16x1xf32>
      %192 = arith.maximumf %190, %191 : vector<16x1xf32>
      %c10_82 = arith.constant 10 : index
      %193 = memref.load %arg11[%c10_82] : memref<16xf32, #tpu.memory_space<smem>>
      %194 = vector.broadcast %193 : f32 to vector<16x1xf32>
      %195 = arith.mulf %192, %194 : vector<16x1xf32>
      %196 = arith.addf %184, %195 : vector<16x1xf32>
      %c11 = arith.constant 11 : index
      %197 = memref.load %arg9[%c11] : memref<16xf32, #tpu.memory_space<smem>>
      %198 = vector.broadcast %197 : f32 to vector<16x1xf32>
      %199 = arith.mulf %60, %198 : vector<16x1xf32>
      %c11_83 = arith.constant 11 : index
      %200 = memref.load %arg10[%c11_83] : memref<16xf32, #tpu.memory_space<smem>>
      %201 = vector.broadcast %200 : f32 to vector<16x1xf32>
      %202 = arith.addf %199, %201 : vector<16x1xf32>
      %cst_84 = arith.constant 0.000000e+00 : f32
      %203 = vector.broadcast %cst_84 : f32 to vector<16x1xf32>
      %204 = arith.maximumf %202, %203 : vector<16x1xf32>
      %c11_85 = arith.constant 11 : index
      %205 = memref.load %arg11[%c11_85] : memref<16xf32, #tpu.memory_space<smem>>
      %206 = vector.broadcast %205 : f32 to vector<16x1xf32>
      %207 = arith.mulf %204, %206 : vector<16x1xf32>
      %208 = arith.addf %196, %207 : vector<16x1xf32>
      %c12 = arith.constant 12 : index
      %209 = memref.load %arg9[%c12] : memref<16xf32, #tpu.memory_space<smem>>
      %210 = vector.broadcast %209 : f32 to vector<16x1xf32>
      %211 = arith.mulf %60, %210 : vector<16x1xf32>
      %c12_86 = arith.constant 12 : index
      %212 = memref.load %arg10[%c12_86] : memref<16xf32, #tpu.memory_space<smem>>
      %213 = vector.broadcast %212 : f32 to vector<16x1xf32>
      %214 = arith.addf %211, %213 : vector<16x1xf32>
      %cst_87 = arith.constant 0.000000e+00 : f32
      %215 = vector.broadcast %cst_87 : f32 to vector<16x1xf32>
      %216 = arith.maximumf %214, %215 : vector<16x1xf32>
      %c12_88 = arith.constant 12 : index
      %217 = memref.load %arg11[%c12_88] : memref<16xf32, #tpu.memory_space<smem>>
      %218 = vector.broadcast %217 : f32 to vector<16x1xf32>
      %219 = arith.mulf %216, %218 : vector<16x1xf32>
      %220 = arith.addf %208, %219 : vector<16x1xf32>
      %c13 = arith.constant 13 : index
      %221 = memref.load %arg9[%c13] : memref<16xf32, #tpu.memory_space<smem>>
      %222 = vector.broadcast %221 : f32 to vector<16x1xf32>
      %223 = arith.mulf %60, %222 : vector<16x1xf32>
      %c13_89 = arith.constant 13 : index
      %224 = memref.load %arg10[%c13_89] : memref<16xf32, #tpu.memory_space<smem>>
      %225 = vector.broadcast %224 : f32 to vector<16x1xf32>
      %226 = arith.addf %223, %225 : vector<16x1xf32>
      %cst_90 = arith.constant 0.000000e+00 : f32
      %227 = vector.broadcast %cst_90 : f32 to vector<16x1xf32>
      %228 = arith.maximumf %226, %227 : vector<16x1xf32>
      %c13_91 = arith.constant 13 : index
      %229 = memref.load %arg11[%c13_91] : memref<16xf32, #tpu.memory_space<smem>>
      %230 = vector.broadcast %229 : f32 to vector<16x1xf32>
      %231 = arith.mulf %228, %230 : vector<16x1xf32>
      %232 = arith.addf %220, %231 : vector<16x1xf32>
      %c14 = arith.constant 14 : index
      %233 = memref.load %arg9[%c14] : memref<16xf32, #tpu.memory_space<smem>>
      %234 = vector.broadcast %233 : f32 to vector<16x1xf32>
      %235 = arith.mulf %60, %234 : vector<16x1xf32>
      %c14_92 = arith.constant 14 : index
      %236 = memref.load %arg10[%c14_92] : memref<16xf32, #tpu.memory_space<smem>>
      %237 = vector.broadcast %236 : f32 to vector<16x1xf32>
      %238 = arith.addf %235, %237 : vector<16x1xf32>
      %cst_93 = arith.constant 0.000000e+00 : f32
      %239 = vector.broadcast %cst_93 : f32 to vector<16x1xf32>
      %240 = arith.maximumf %238, %239 : vector<16x1xf32>
      %c14_94 = arith.constant 14 : index
      %241 = memref.load %arg11[%c14_94] : memref<16xf32, #tpu.memory_space<smem>>
      %242 = vector.broadcast %241 : f32 to vector<16x1xf32>
      %243 = arith.mulf %240, %242 : vector<16x1xf32>
      %244 = arith.addf %232, %243 : vector<16x1xf32>
      %c15 = arith.constant 15 : index
      %245 = memref.load %arg9[%c15] : memref<16xf32, #tpu.memory_space<smem>>
      %246 = vector.broadcast %245 : f32 to vector<16x1xf32>
      %247 = arith.mulf %60, %246 : vector<16x1xf32>
      %c15_95 = arith.constant 15 : index
      %248 = memref.load %arg10[%c15_95] : memref<16xf32, #tpu.memory_space<smem>>
      %249 = vector.broadcast %248 : f32 to vector<16x1xf32>
      %250 = arith.addf %247, %249 : vector<16x1xf32>
      %cst_96 = arith.constant 0.000000e+00 : f32
      %251 = vector.broadcast %cst_96 : f32 to vector<16x1xf32>
      %252 = arith.maximumf %250, %251 : vector<16x1xf32>
      %c15_97 = arith.constant 15 : index
      %253 = memref.load %arg11[%c15_97] : memref<16xf32, #tpu.memory_space<smem>>
      %254 = vector.broadcast %253 : f32 to vector<16x1xf32>
      %255 = arith.mulf %252, %254 : vector<16x1xf32>
      %256 = arith.addf %244, %255 : vector<16x1xf32>
      %257 = arith.negf %256 : vector<16x1xf32>
      %258 = math.exp %257 : vector<16x1xf32>
      %cst_98 = arith.constant 1.000000e+00 : f32
      %259 = vector.broadcast %cst_98 : f32 to vector<16x1xf32>
      %260 = arith.addf %259, %258 : vector<16x1xf32>
      %261 = arith.divf %259, %260 : vector<16x1xf32>
      %c0_99 = arith.constant 0 : index
      %c0_100 = arith.constant 0 : index
      %c0_101 = arith.constant 0 : index
      %262 = vector.load %arg13[%c0_99, %c0_100, %c0_101] : memref<1x16x1xf32, #tpu.memory_space<vmem>>, vector<1x16x1xf32>
      %263 = vector.shape_cast %262 : vector<1x16x1xf32> to vector<16x1xf32>
      %264 = vector.shape_cast %261 : vector<16x1xf32> to vector<1x16x1xf32>
      tpu.vector_store %arg13[%c0_99, %c0_100, %c0_101], %264 {strides = array<i32>} : memref<1x16x1xf32, #tpu.memory_space<vmem>>, vector<1x16x1xf32>,
    } else {
    }
    return
  }
  func.func @transform_0(%arg0: i32, %arg1: i32) -> (i32, i32, i32) {
    %c0_i32 = arith.constant 0 : i32
    %c0_i32_0 = arith.constant 0 : i32
    %c0_i32_1 = arith.constant 0 : i32
    return %arg0, %c0_i32, %c0_i32_0 : i32, i32, i32
  }
  func.func @transform_1(%arg0: i32, %arg1: i32) -> (i32, i32, i32, i32) {
    %c0_i32 = arith.constant 0 : i32
    %c0_i32_0 = arith.constant 0 : i32
    %c0_i32_1 = arith.constant 0 : i32
    return %arg0, %c0_i32, %arg1, %c0_i32_0 : i32, i32, i32, i32
  }
  func.func @transform_2(%arg0: i32, %arg1: i32) -> (i32, i32, i32) {
    %c0_i32 = arith.constant 0 : i32
    %c0_i32_0 = arith.constant 0 : i32
    return %arg0, %c0_i32, %arg1 : i32, i32, i32
  }
  func.func @transform_3(%arg0: i32, %arg1: i32) -> (i32, i32) {
    %c0_i32 = arith.constant 0 : i32
    %c0_i32_0 = arith.constant 0 : i32
    %c0_i32_1 = arith.constant 0 : i32
    return %c0_i32, %c0_i32_0 : i32, i32
  }
  func.func @transform_4(%arg0: i32, %arg1: i32) -> (i32, i32) {
    %c0_i32 = arith.constant 0 : i32
    %c0_i32_0 = arith.constant 0 : i32
    %c0_i32_1 = arith.constant 0 : i32
    return %c0_i32, %c0_i32_0 : i32, i32
  }
  func.func @transform_5(%arg0: i32, %arg1: i32) -> (i32, i32) {
    %c0_i32 = arith.constant 0 : i32
    %c0_i32_0 = arith.constant 0 : i32
    %c0_i32_1 = arith.constant 0 : i32
    return %c0_i32, %c0_i32_0 : i32, i32
  }
  func.func @transform_6(%arg0: i32, %arg1: i32) -> (i32, i32) {
    %c0_i32 = arith.constant 0 : i32
    %c0_i32_0 = arith.constant 0 : i32
    %c0_i32_1 = arith.constant 0 : i32
    return %c0_i32, %c0_i32_0 : i32, i32
  }
  func.func @transform_7(%arg0: i32, %arg1: i32) -> i32 {
    %c0_i32 = arith.constant 0 : i32
    %c0_i32_0 = arith.constant 0 : i32
    return %c0_i32 : i32
  }
  func.func @transform_8(%arg0: i32, %arg1: i32) -> i32 {
    %c0_i32 = arith.constant 0 : i32
    %c0_i32_0 = arith.constant 0 : i32
    return %c0_i32 : i32
  }
  func.func @transform_9(%arg0: i32, %arg1: i32) -> i32 {
    %c0_i32 = arith.constant 0 : i32
    %c0_i32_0 = arith.constant 0 : i32
    return %c0_i32 : i32
  }
  func.func @transform_10(%arg0: i32, %arg1: i32) -> i32 {
    %c0_i32 = arith.constant 0 : i32
    %c0_i32_0 = arith.constant 0 : i32
    return %c0_i32 : i32
  }
  func.func @transform_11(%arg0: i32, %arg1: i32) -> (i32, i32, i32) {
    %c0_i32 = arith.constant 0 : i32
    %c0_i32_0 = arith.constant 0 : i32
    %c0_i32_1 = arith.constant 0 : i32
    return %arg0, %c0_i32, %c0_i32_0 : i32, i32, i32
  }
}

</mosaic_0001>

<bundles_post_ra>
// kernel: tpu_custom_call.1
= control target key start
LH: loop header
LB: loop body
LE: loop exit
PB: predicated region body
PF: predicated region fallthrough
CT: control target
= control target key end

     0   :  { %s3617_s0 = inlined_call_operand.vmem [shape: bf16[1,16,32], index: 0, kind: input, shape index: {}]   ;;  %s3618_s1 = inlined_call_operand.vmem [shape: bf16[1,2,256,32], index: 1, kind: input, shape index: {}]   ;;  %s3619_s2 = inlined_call_operand.vmem [shape: f32[1,2,256], index: 2, kind: input, shape index: {}]   ;;  %s3620_s3 = inlined_call_operand.vmem [shape: bf16[32,32], index: 3, kind: input, shape index: {}]   ;;  %s3621_s4 = inlined_call_operand.vmem [shape: f32[1,32], index: 4, kind: input, shape index: {}]   ;;  %s3622_s5 = inlined_call_operand.vmem [shape: bf16[32,32], index: 5, kind: input, shape index: {}]   ;;  %s3623_s6 = inlined_call_operand.vmem [shape: f32[1,32], index: 6, kind: input, shape index: {}]   ;;  %s3624_s7 = inlined_call_operand.vmem [shape: f32[16], index: 7, kind: input, shape index: {}]   ;;  %s3625_s8 = inlined_call_operand.vmem [shape: f32[16], index: 8, kind: input, shape index: {}]   ;;  %s3626_s9 = inlined_call_operand.vmem [shape: f32[16], index: 9, kind: input, shape index: {}]   ;;  %s3627_s10 = inlined_call_operand.<no memory space> [shape: f32[1], index: 10, kind: input, shape index: {}]   ;;  %s3628_s11 = inlined_call_operand.vmem [shape: f32[1,16,1], index: 11, kind: output, shape index: {}]  }
   0x1   :  { %3686 = sst [smem:[#allocation64_spill]] %s3627_s10 }
   0x2   :  { %3687 = sst [smem:[#allocation65_spill]] %s3628_s11 }
   0x3   :  { %17 = vsyncpa [#allocation6], 0 }
   0x4   :  { %18 = vsyncpa [#allocation8], 0  ;;  %s49_s19 = sshll.u32 %s3625_s8, 4  ;;  %s39_s22 = sshll.u32 %s3624_s7, 4  ;;  %s50_s19 = int_to_ptr.vmem [resolvable:$true] %s49_s19  ;;  %s40_s22 = int_to_ptr.vmem [resolvable:$true] %s39_s22 }
   0x5   :  { %s2367_s23 = scalar_lea.vmem %s50_s19, 16  ;;  %p2372_p1 = scmp.lt.s32.totalorder %s50_s19, %s50_s19 }
   0x6   :  { %p2368_p0 = scmp.ne.s32.totalorder %s50_s19, %s2367_s23  ;;  %p2373_p2 = scmp.lt.s32.totalorder %s2367_s23, %s2367_s23 }
   0x8   :  { %p2374_p3 = por %p2373_p2, %p2372_p1 }
   0xa   :  { %p2375_p4 = pnand %p2374_p3, %p2368_p0 }
   0xc   :  { %2378 = shalt.err (!%p2375_p4)
}
   0xd   :  { %s2407_s24 = smov [#allocation7]   ;;  %s2379_s25 = scalar_lea.vmem %s40_s22, 16 }
   0xe   :  { %52 = dma.vmem_to_smem %s50_s19, 16, %s2407_s24, [#allocation8]  }
   0xf   :  { %p2380_p5 = scmp.ne.s32.totalorder %s40_s22, %s2379_s25  ;;  %p2384_p6 = scmp.lt.s32.totalorder %s40_s22, %s40_s22 }
  0x10   :  { %p2385_p7 = scmp.lt.s32.totalorder %s2379_s25, %s2379_s25 }
  0x12   :  { %p2386_p8 = por %p2385_p7, %p2384_p6 }
  0x14   :  { %p2387_p9 = pnand %p2386_p8, %p2380_p5 }
  0x16   :  { %2390 = shalt.err (!%p2387_p9)
}
  0x17   :  { %s2408_s8 = smov [#allocation5]   ;;  %s59_s27 = sshll.u32 %s3626_s9, 4  ;;  %s60_s27 = int_to_ptr.vmem [resolvable:$true] %s59_s27 }
  0x18   :  { %42 = dma.vmem_to_smem %s40_s22, 16, %s2408_s8, [#allocation6]  }
  0x19   :  { %s2391_s28 = scalar_lea.vmem %s60_s27, 16  ;;  %p2396_p11 = scmp.lt.s32.totalorder %s60_s27, %s60_s27 }
  0x1a   :  { %p2392_p10 = scmp.ne.s32.totalorder %s60_s27, %s2391_s28  ;;  %p2397_p12 = scmp.lt.s32.totalorder %s2391_s28, %s2391_s28 }
  0x1c   :  { %p2398_p13 = por %p2397_p12, %p2396_p11 }
  0x1e   :  { %p2399_p0 = pnand %p2398_p13, %p2392_p10 }
  0x20   :  { %2402 = shalt.err (!%p2399_p0)
}
  0x21   :  { %s2409_s29 = smov [#allocation9]  }
  0x22   :  { %62 = dma.vmem_to_smem %s60_s27, 16, %s2409_s29, [#allocation8]  }
  0x23   :  { %2403 = dma.done.wait [#allocation6], 16  }
  0x24   :  { %2404 = vsyncadd [#allocation6], 4294967280 }
  0x25   :  { %2405 = dma.done.wait [#allocation8], 32  }
  0x26   :  { %2406 = vsyncadd [#allocation8], 4294967264 }
  0x27   :  { %74 = sfence }
  0x28   :  { %v2188_v0 = vld [vmem:[%s3622_s5] sm:$0xff]   ;;  %vm110_vm0 = vcmask 261120   ;;  %v2189_v1 = vld [vmem:[%s3622_s5 + $0x8] sm:$0xff]   ;;  %v2410_v3 = vmov 0.0   ;;  %vm2411_vm1 = vmmov 0   ;;  %v2193_v6 = vld [vmem:[%s3618_s1 + $0x10] sm:$0xff]  }
  0x29   :  { %2094 = vmatprep.subr.bf16.mxu1 %v2188_v0  ;;  %v2190_v2 = vld [vmem:[%s3618_s1] sm:$0xff]   ;;  %2086 = vmatprep.subr.bf16.mxu0 %v2410_v3  ;;  %v2191_v5 = vld [vmem:[%s3618_s1 + $0x8] sm:$0xff]   ;;  %v2194_v8 = vld [vmem:[%s3618_s1 + $0x18] sm:$0xff]   ;;  %vm171_vm2 = vcmask 7168   ;;  %s3224_s19 = sld [smem:[#allocation5]]  ;;  %s3228_s20 = sld [smem:[#allocation5 + $0x2]] }
  0x2a   :  { %2095 = vmatpush3.bf16.msra.mxu1 %v2188_v0  ;;  %2090 = vmatprep.mubr.msk.bf16.mxu0 %vm2411_vm1, %v2410_v3  ;;  %v2192_v4 = vld [vmem:[%s3622_s5] sm:$0xff]   ;;  %v2201_v7 = vld [vmem:[%s3622_s5 + $0x8] sm:$0xff]   ;;  %v2197_v12 = vld [vmem:[%s3618_s1 + $0x30] sm:$0xff]   ;;  %s3232_s21 = sld [smem:[#allocation7]]  ;;  %s3234_s22 = sld [smem:[#allocation7 + $0x1]] }
  0x2b   :  { %2096 = vmatprep.subr.bf16.mxu1 %v2189_v1  ;;  %2098 = vmatprep.mubr.msk.bf16.mxu1 %vm110_vm0, %v2190_v2  ;;  %v2195_v9 = vld [vmem:[%s3618_s1 + $0x20] sm:$0xff]   ;;  %v2196_v10 = vld [vmem:[%s3618_s1 + $0x28] sm:$0xff]   ;;  %v2198_v15 = vld [vmem:[%s3618_s1 + $0x38] sm:$0xff]   ;;  %s3236_s23 = sld [smem:[#allocation7 + $0x2]]  ;;  %s3238_s24 = sld [smem:[#allocation5 + $0x4]] }
  0x2c   :  { %v2210_v11 = vld [vmem:[%s3620_s3] sm:$0xff]   ;;  %v2211_v13 = vld [vmem:[%s3620_s3 + $0x8] sm:$0xff]   ;;  %v2202_v18 = vld [vmem:[%s3618_s1 + $0x50] sm:$0xff]   ;;  %s3240_s25 = sld [smem:[#allocation7 + $0x3]]  ;;  %s3243_s8 = sld [smem:[#allocation5 + $0x5]] }
  0x2d   :  { %2087 = vmatpush3.bf16.msra.mxu0 %v2210_v11  ;;  %v2213_v14 = vld [vmem:[%s3617_s0] sm:$0xff]   ;;  %v2200_v17 = vld [vmem:[%s3618_s1 + $0x48] sm:$0xff]   ;;  %v2203_v19 = vld [vmem:[%s3618_s1 + $0x58] sm:$0xff]   ;;  %s3226_s0 = sld [smem:[#allocation5 + $0x1]]  ;;  %s3245_s7 = sld [smem:[#allocation5 + $0x6]] }
  0x2e   :  { %2097 = vmatpush3.bf16.msra.mxu1 %v2189_v1  ;;  %2088 = vmatprep.subr.bf16.mxu0 %v2410_v3  ;;  %v2199_v16 = vld [vmem:[%s3618_s1 + $0x40] sm:$0xff]   ;;  %v2205_v21 = vld [vmem:[%s3618_s1 + $0x68] sm:$0xff]   ;;  %v2206_v22 = vld [vmem:[%s3618_s1 + $0x70] sm:$0xff]   ;;  %s3247_s26 = sld [smem:[#allocation9]]  ;;  %s3249_s27 = sld [smem:[#allocation7 + $0x4]] }
  0x2f   :  { %2130 = vmatprep.subr.bf16.mxu1 %v2192_v4  ;;  %v2204_v20 = vld [vmem:[%s3618_s1 + $0x60] sm:$0xff]   ;;  %v2207_v23 = vld [vmem:[%s3618_s1 + $0x78] sm:$0xff]   ;;  %v2209_v25 = vld [vmem:[%s3618_s1 + $0x88] sm:$0xff]   ;;  %s3251_s28 = sld [smem:[#allocation5 + $0x7]]  ;;  %s3255_s5 = sld [smem:[#allocation9 + $0x1]] }
  0x30   :  { %v2208_v24 = vld [vmem:[%s3618_s1 + $0x80] sm:$0xff]   ;;  %v2212_v26 = vld [vmem:[%s3618_s1 + $0x90] sm:$0xff]   ;;  %v2214_v27 = vld [vmem:[%s3618_s1 + $0x98] sm:$0xff]   ;;  %s3259_s29 = sld [smem:[#allocation7 + $0x5]]  ;;  %s3261_s30 = sld [smem:[#allocation9 + $0x2]] }
  0x31   :  { %2099 = vmatmul.mubr.msk.bf16.vlgmr.msra.gmra.mrb[0].mxu1 %vm110_vm0, %v2191_v5  ;;  %2089 = vmatpush3.bf16.msra.mxu0 %v2211_v13  ;;  %v2215_v28 = vld [vmem:[%s3618_s1 + $0xa0] sm:$0xff]   ;;  %v2216_v29 = vld [vmem:[%s3618_s1 + $0xa8] sm:$0xff]   ;;  %v2217_v30 = vld [vmem:[%s3618_s1 + $0xb0] sm:$0xff]   ;;  %3738 = sst [smem:[#allocation37_spill]] %s3238_s24  ;;  %s3263_s12 = sld [smem:[#allocation7 + $0x6]] }
  0x32   :  { %2131 = vmatpush3.bf16.msra.mxu1 %v2192_v4  ;;  %2102 = vmatprep.mubr.msk.bf16.mxu1 %vm110_vm0, %v2193_v6  ;;  %v2218_v31 = vld [vmem:[%s3618_s1 + $0xb8] sm:$0xff]   ;;  %v2219_v32 = vld [vmem:[%s3618_s1 + $0xc0] sm:$0xff]   ;;  %v2220_v33 = vld [vmem:[%s3618_s1 + $0xc8] sm:$0xff]   ;;  %3739 = sst [smem:[#allocation38_spill]] %s3240_s25  ;;  %s3269_s9 = sld [smem:[#allocation7 + $0x7]] }
  0x33   :  { %2132 = vmatprep.subr.bf16.mxu1 %v2201_v7  ;;  %v2221_v34 = vld [vmem:[%s3618_s1 + $0xd0] sm:$0xff]   ;;  %v2222_v35 = vld [vmem:[%s3618_s1 + $0xd8] sm:$0xff]   ;;  %v2223_v36 = vld [vmem:[%s3618_s1 + $0xe0] sm:$0xff]   ;;  %3740 = sst [smem:[#allocation39_spill]] %s3243_s8  ;;  %s3271_s13 = sld [smem:[#allocation5 + $0x8]] }
  0x34   :  { %2091 = vmatmul.mubr.msk.bf16.vlgmr.msra.gmra.mrb[0].mxu0 %vm110_vm0, %v2213_v14  ;;  %v2224_v37 = vld [vmem:[%s3618_s1 + $0xe8] sm:$0xff]   ;;  %v2225_v38 = vld [vmem:[%s3618_s1 + $0xf0] sm:$0xff]   ;;  %v2226_v39 = vld [vmem:[%s3618_s1 + $0xf8] sm:$0xff]   ;;  %3741 = sst [smem:[#allocation40_spill]] %s3245_s7  ;;  %s3290_s15 = sld [smem:[#allocation9 + $0x4]] }
  0x35   :  { %v2635_v40 = vld [vmem:[%s3623_s6] ss:$0 sm:$0xff]  ;;  %3742 = sst [smem:[#allocation41_spill]] %s3247_s26  ;;  %s3275_s14 = sld [smem:[#allocation9 + $0x3]] }
  0x36   :  { %2133 = vmatpush3.bf16.msra.mxu1 %v2201_v7  ;;  %3743 = sst [smem:[#allocation42_spill]] %s3249_s27  ;;  %s3294_s16 = sld [smem:[#allocation5 + $0x9]] }
  0x37   :  { %3744 = sst [smem:[#allocation43_spill]] %s3251_s28  ;;  %s3296_s1 = sld [smem:[#allocation9 + $0x5]] }
  0x38   :  { %3745 = sst [smem:[#allocation44_spill]] %s3269_s9  ;;  %s3310_s6 = sld [smem:[#allocation7 + $0x8]] }
  0x39   :  { %2103 = vmatmul.mubr.msk.bf16.gmra.mrb[4].mxu1 %vm110_vm0, %v2194_v8  ;;  %3746 = sst [smem:[#allocation45_spill]] %s3271_s13  ;;  %s3314_s17 = sld [smem:[#allocation9 + $0x6]] }
  0x3a   :  { %2106 = vmatprep.mubr.msk.bf16.mxu1 %vm110_vm0, %v2195_v9  ;;  %s3326_s11 = sld [smem:[#allocation7 + $0x9]]  ;;  %s3343_s18 = sld [smem:[#allocation5 + $0xc]] }
  0x3b   :  { %3747 = sst [smem:[#allocation46_spill]] %s3275_s14  ;;  %s3345_s3 = sld [smem:[#allocation5 + $0xd]] }
  0x3c   :  { %3748 = sst [smem:[#allocation47_spill]] %s3294_s16 }
  0x3e   :  { %3749 = sst [smem:[#allocation48_spill]] %s3310_s6 }
  0x40   :  { %3752 = sst [smem:[#allocation51_spill]] %s3343_s18 }
  0x41   :  { %2107 = vmatmul.mubr.msk.bf16.gmra.mrb[8].mxu1 %vm110_vm0, %v2196_v10 }
  0x42   :  { %2110 = vmatprep.mubr.msk.bf16.mxu1 %vm110_vm0, %v2197_v12 }
  0x49   :  { %2111 = vmatmul.mubr.msk.bf16.gmra.mrb[12].mxu1 %vm110_vm0, %v2198_v15 }
  0x4a   :  { %2114 = vmatprep.mubr.msk.bf16.mxu1 %vm110_vm0, %v2199_v16 }
  0x51   :  { %2115 = vmatmul.mubr.msk.bf16.gmra.mrb[16].mxu1 %vm110_vm0, %v2200_v17 }
  0x52   :  { %2118 = vmatprep.mubr.msk.bf16.mxu1 %vm110_vm0, %v2202_v18 }
  0x59   :  { %2119 = vmatmul.mubr.msk.bf16.gmra.mrb[20].mxu1 %vm110_vm0, %v2203_v19 }
  0x5a   :  { %2122 = vmatprep.mubr.msk.bf16.mxu1 %vm110_vm0, %v2204_v20 }
  0x61   :  { %2123 = vmatmul.mubr.msk.bf16.gmra.mrb[24].mxu1 %vm110_vm0, %v2205_v21 }
  0x62   :  { %2126 = vmatprep.mubr.msk.bf16.mxu1 %vm110_vm0, %v2206_v22 }
  0x69   :  { %2127 = vmatmul.mubr.msk.bf16.gmra.mrb[28].mxu1 %vm110_vm0, %v2207_v23 }
  0x6a   :  { %2134 = vmatprep.mubr.msk.bf16.mxu1 %vm110_vm0, %v2208_v24 }
  0x71   :  { %2135 = vmatmul.mubr.msk.bf16.vlgmr.msra.gmra.mrb[32].mxu1 %vm110_vm0, %v2209_v25 }
  0x72   :  { %2138 = vmatprep.mubr.msk.bf16.mxu1 %vm110_vm0, %v2212_v26 }
  0x79   :  { %2139 = vmatmul.mubr.msk.bf16.gmra.mrb[36].mxu1 %vm110_vm0, %v2214_v27 }
  0x7a   :  { %2142 = vmatprep.mubr.msk.bf16.mxu1 %vm110_vm0, %v2215_v28 }
  0x81   :  { %2143 = vmatmul.mubr.msk.bf16.gmra.mrb[40].mxu1 %vm110_vm0, %v2216_v29 }
  0x82   :  { %2146 = vmatprep.mubr.msk.bf16.mxu1 %vm110_vm0, %v2217_v30 }
  0x89   :  { %2147 = vmatmul.mubr.msk.bf16.gmra.mrb[44].mxu1 %vm110_vm0, %v2218_v31 }
  0x8a   :  { %2150 = vmatprep.mubr.msk.bf16.mxu1 %vm110_vm0, %v2219_v32 }
  0x91   :  { %2151 = vmatmul.mubr.msk.bf16.gmra.mrb[48].mxu1 %vm110_vm0, %v2220_v33 }
  0x92   :  { %2154 = vmatprep.mubr.msk.bf16.mxu1 %vm110_vm0, %v2221_v34 }
  0x99   :  { %2155 = vmatmul.mubr.msk.bf16.gmra.mrb[52].mxu1 %vm110_vm0, %v2222_v35 }
  0x9a   :  { %2158 = vmatprep.mubr.msk.bf16.mxu1 %vm110_vm0, %v2223_v36 }
  0xa1   :  { %2159 = vmatmul.mubr.msk.bf16.gmra.mrb[56].mxu1 %vm110_vm0, %v2224_v37 }
  0xa2   :  { %2162 = vmatprep.mubr.msk.bf16.mxu1 %vm110_vm0, %v2225_v38 }
  0xa9   :  { %2163 = vmatmul.mubr.msk.bf16.gmra.mrb[60].mxu1 %vm110_vm0, %v2226_v39 }
 0x104   :  { %v2100_v41 = vpop.f32.mrb[0].mxu1 }
 0x105   :  { %v2638_v42 = vadd.f32 %v2100_v41, %v2635_v40  ;;  %v392_v43 = vpop.f32.mrb[1].mxu1 }
 0x106   :  { %v2641_v44 = vadd.f32 %v2635_v40, %v392_v43  ;;  %v2101_v45 = vpop.f32.mrb[2].mxu1 }
 0x107   :  { %v2644_v46 = vadd.f32 %v2101_v45, %v2635_v40  ;;  %v395_v47 = vpop.f32.mrb[3].mxu1  ;;  %v521_v48 = vmul.f32 %v2638_v42, %v2638_v42  ;;  %v2665_v1 = vpop.f32.mrb[0].mxu0 }
 0x108   :  { %v2649_v49 = vadd.f32 %v2635_v40, %v395_v47  ;;  %v519_v52 = vmul.f32 %v2641_v44, %v2641_v44  ;;  %v2092_v2 = vpop.f32.mrb[1].mxu0 }
 0x109   :  { %v557_v50 = vsel %vm110_vm0, %v521_v48, 0.0  ;;  %v522_v51 = vmul.f32 %v2644_v46, %v2644_v46  ;;  %v2667_v3 = vpop.f32.mrb[2].mxu0 }
 0x10a   :  { %558 = vadd.xlane.f32.xlu0 %v557_v50  ;;  %v551_v56 = vsel %vm110_vm0, %v519_v52, 0.0  ;;  %v520_v57 = vmul.f32 %v2649_v49, %v2649_v49  ;;  %v2093_v5 = vpop.f32.mrb[3].mxu0 }
 0x10b   :  { %v560_v53 = vsel %vm110_vm0, %v522_v51, 0.0 }
 0x10c   :  { %561 = vadd.xlane.f32.xlu1 %v560_v53  ;;  %v2104_v54 = vpop.f32.mrb[4].mxu1  ;;  %v554_v60 = vsel %vm110_vm0, %v520_v57, 0.0 }
 0x10d   :  { %v408_v55 = vpop.f32.mrb[5].mxu1  ;;  %v2694_v19 = vadd.f32 %v2104_v54, %v2635_v40 }
 0x10e   :  { %v2105_v58 = vpop.f32.mrb[6].mxu1  ;;  %552 = vadd.xlane.f32.xlu0 %v551_v56  ;;  %v2678_v10 = vadd.f32 %v2635_v40, %v408_v55 }
 0x10f   :  { %v411_v59 = vpop.f32.mrb[7].mxu1  ;;  %v525_v28 = vmul.f32 %v2694_v19, %v2694_v19  ;;  %v2724_v38 = vadd.f32 %v2105_v58, %v2635_v40 }
 0x110   :  { %v523_v21 = vmul.f32 %v2678_v10, %v2678_v10  ;;  %v2709_v29 = vadd.f32 %v2635_v40, %v411_v59 }
 0x111   :  { %v569_v36 = vsel %vm110_vm0, %v525_v28, 0.0  ;;  %v526_v54 = vmul.f32 %v2724_v38, %v2724_v38  ;;  %v1854_v28 = vld [vmem:[%s3621_s4] ss:$0 sm:$0xff]  ;;  %s3312_s4 = sld [smem:[#allocation5 + $0xa]] }
 0x112   :  { %555 = vadd.xlane.f32.xlu0 %v554_v60  ;;  %v563_v27 = vsel %vm110_vm0, %v523_v21, 0.0  ;;  %v524_v41 = vmul.f32 %v2709_v29, %v2709_v29 }
 0x113   :  { %v572_v60 = vsel %vm110_vm0, %v526_v54, 0.0 }
 0x114   :  { %v2108_v61 = vpop.f32.mrb[8].mxu1  ;;  %v566_v53 = vsel %vm110_vm0, %v524_v41, 0.0 }
 0x115   :  { %v424_v62 = vpop.f32.mrb[9].mxu1  ;;  %v2742_v56 = vadd.f32 %v2108_v61, %v2635_v40 }
 0x116   :  { %v2661_v63 = vpop.f32.mrb[10].mxu1  ;;  %v2730_v45 = vadd.f32 %v2635_v40, %v424_v62 }
 0x117   :  { %v2663_v0 = vpop.f32.mrb[11].mxu1  ;;  %3750 = sst [smem:[#allocation49_spill]] %s3312_s4 }
 0x118   :  { %v527_v58 = vmul.f32 %v2730_v45, %v2730_v45 }
 0x11c   :  { %v2669_v4 = vpop.f32.mrb[12].mxu1 }
 0x11d   :  { %v2671_v6 = vpop.f32.mrb[13].mxu1 }
 0x11e   :  { %v2673_v7 = vpop.f32.mrb[14].mxu1 }
 0x11f   :  { %v2675_v8 = vpop.f32.mrb[15].mxu1 }
 0x124   :  { %v2116_v9 = vpop.f32.mrb[16].mxu1 }
 0x125   :  { %v2681_v11 = vadd.f32 %v2116_v9, %v2635_v40  ;;  %v456_v12 = vpop.f32.mrb[17].mxu1  ;;  %v575_v9 = vsel %vm110_vm0, %v527_v58, 0.0  ;;  %v2825_v58 = vadd.f32 %v2635_v40, %v2675_v8 }
 0x126   :  { %v2684_v13 = vadd.f32 %v2635_v40, %v456_v12  ;;  %v2117_v14 = vpop.f32.mrb[18].mxu1  ;;  %v529_v12 = vmul.f32 %v2742_v56, %v2742_v56 }
 0x127   :  { %v459_v15 = vpop.f32.mrb[19].mxu1  ;;  %v537_v16 = vmul.f32 %v2681_v11, %v2681_v11  ;;  %v2700_v22 = vadd.f32 %v2117_v14, %v2635_v40  ;;  %v2761_v14 = vadd.f32 %v2635_v40, %v2663_v0  ;;  %v2776_v0 = vadd.f32 %v2661_v63, %v2635_v40 }
 0x128   :  { %v2689_v17 = vadd.f32 %v2635_v40, %v459_v15  ;;  %v535_v18 = vmul.f32 %v2684_v13, %v2684_v13 }
 0x129   :  { %v605_v20 = vsel %vm110_vm0, %v537_v16, 0.0  ;;  %v538_v33 = vmul.f32 %v2700_v22, %v2700_v22 }
 0x12a   :  { %606 = vadd.xlane.f32.xlu0 %v605_v20  ;;  %v599_v23 = vsel %vm110_vm0, %v535_v18, 0.0  ;;  %v536_v24 = vmul.f32 %v2689_v17, %v2689_v17 }
 0x12b   :  { %600 = vadd.xlane.f32.xlu1 %v599_v23  ;;  %v608_v39 = vsel %vm110_vm0, %v538_v33, 0.0  ;;  %v581_v23 = vsel %vm110_vm0, %v529_v12, 0.0 }
 0x12c   :  { %v2120_v25 = vpop.f32.mrb[20].mxu1  ;;  %v602_v32 = vsel %vm110_vm0, %v536_v24, 0.0 }
 0x12d   :  { %v472_v26 = vpop.f32.mrb[21].mxu1  ;;  %v2718_v35 = vadd.f32 %v2120_v25, %v2635_v40 }
 0x12e   :  { %v2712_v30 = vadd.f32 %v2635_v40, %v472_v26  ;;  %v2121_v31 = vpop.f32.mrb[22].mxu1  ;;  %564 = vadd.xlane.f32.xlu0 %v563_v27  ;;  %v528_v26 = vmul.f32 %v2761_v14, %v2761_v14 }
 0x12f   :  { %v475_v34 = vpop.f32.mrb[23].mxu1  ;;  %603 = vadd.xlane.f32.xlu1 %v602_v32  ;;  %v541_v50 = vmul.f32 %v2718_v35, %v2718_v35  ;;  %v2748_v59 = vadd.f32 %v2121_v31, %v2635_v40  ;;  %v2788_v31 = vadd.f32 %v2635_v40, %v2671_v6  ;;  %v2802_v6 = vadd.f32 %v1854_v28, %v2665_v1 }
 0x130   :  { %v539_v37 = vmul.f32 %v2712_v30, %v2712_v30  ;;  %v2736_v51 = vadd.f32 %v2635_v40, %v475_v34 }
 0x131   :  { %v617_v57 = vsel %vm110_vm0, %v541_v50, 0.0  ;;  %v542_v18 = vmul.f32 %v2748_v59, %v2748_v59  ;;  %v155_v54 = vmul.f32 %v2802_v6, %v2802_v6 }
 0x132   :  { %570 = vadd.xlane.f32.xlu0 %v569_v36  ;;  %v611_v48 = vsel %vm110_vm0, %v539_v37, 0.0  ;;  %v540_v62 = vmul.f32 %v2736_v51, %v2736_v51  ;;  %v578_v37 = vsel %vm110_vm0, %v528_v26, 0.0 }
 0x133   :  { %609 = vadd.xlane.f32.xlu1 %v608_v39  ;;  %v620_v25 = vsel %vm110_vm0, %v542_v18, 0.0  ;;  %v530_v39 = vmul.f32 %v2776_v0, %v2776_v0  ;;  %v2842_v18 = vadd.f32 %v1854_v28, %v2667_v3 }
 0x134   :  { %v2124_v43 = vpop.f32.mrb[24].mxu1  ;;  %v614_v16 = vsel %vm110_vm0, %v540_v62, 0.0 }
 0x135   :  { %v488_v47 = vpop.f32.mrb[25].mxu1  ;;  %v2769_v21 = vadd.f32 %v2124_v43, %v2635_v40  ;;  %v584_v50 = vsel %vm110_vm0, %v530_v39, 0.0  ;;  %v156_v39 = vmul.f32 %v2842_v18, %v2842_v18 }
 0x136   :  { %v2125_v52 = vpop.f32.mrb[26].mxu1  ;;  %612 = vadd.xlane.f32.xlu0 %v611_v48  ;;  %v2754_v5 = vadd.f32 %v2635_v40, %v488_v47  ;;  %v531_v47 = vmul.f32 %v2788_v31, %v2788_v31 }
 0x137   :  { %v491_v55 = vpop.f32.mrb[27].mxu1  ;;  %567 = vadd.xlane.f32.xlu1 %v566_v53  ;;  %v545_v33 = vmul.f32 %v2769_v21, %v2769_v21  ;;  %v2808_v48 = vadd.f32 %v2125_v52, %v2635_v40 }
 0x138   :  { %v543_v24 = vmul.f32 %v2754_v5, %v2754_v5  ;;  %v2794_v34 = vadd.f32 %v2635_v40, %v491_v55  ;;  %v587_v52 = vsel %vm110_vm0, %v531_v47, 0.0 }
 0x139   :  { %v629_v43 = vsel %vm110_vm0, %v545_v33, 0.0 }
 0x13a   :  { %618 = vadd.xlane.f32.xlu0 %v617_v57  ;;  %v623_v63 = vsel %vm110_vm0, %v543_v24, 0.0  ;;  %v544_v53 = vmul.f32 %v2794_v34, %v2794_v34  ;;  %v532_v24 = vmul.f32 %v2825_v58, %v2825_v58 }
 0x13b   :  { %573 = vadd.xlane.f32.xlu1 %v572_v60 }
 0x13c   :  { %v2128_v2 = vpop.f32.mrb[28].mxu1  ;;  %v626_v62 = vsel %vm110_vm0, %v544_v53, 0.0  ;;  %v160_v53 = vsel %vm110_vm0, %v156_v39, 0.0 }
 0x13d   :  { %v504_v61 = vpop.f32.mrb[29].mxu1  ;;  %v2850_v26 = vadd.f32 %v2128_v2, %v2635_v40 }
 0x13e   :  { %v2763_v15 = vpop.f32.mrb[30].mxu1  ;;  %576 = vadd.xlane.f32.xlu0 %v575_v9  ;;  %v2818_v55 = vadd.f32 %v2635_v40, %v504_v61  ;;  %v546_v9 = vmul.f32 %v2808_v48, %v2808_v48  ;;  %v157_v61 = vsel %vm110_vm0, %v155_v54, 0.0 }
 0x13f   :  { %v507_v20 = vpop.f32.mrb[31].mxu1  ;;  %615 = vadd.xlane.f32.xlu1 %v614_v16  ;;  %v2837_v16 = vadd.f32 %v2669_v4, %v2635_v40 }
 0x140   :  { %v547_v8 = vmul.f32 %v2818_v55, %v2818_v55  ;;  %v2858_v3 = vadd.f32 %v2635_v40, %v507_v20  ;;  %v549_v20 = vmul.f32 %v2850_v26, %v2850_v26 }
 0x141   :  { %v533_v33 = vmul.f32 %v2837_v16, %v2837_v16 }
 0x142   :  { %582 = vadd.xlane.f32.xlu0 %v581_v23  ;;  %v632_v23 = vsel %vm110_vm0, %v546_v9, 0.0  ;;  %v548_v54 = vmul.f32 %v2858_v3, %v2858_v3 }
 0x143   :  { %621 = vadd.xlane.f32.xlu1 %v620_v25  ;;  %v593_v47 = vsel %vm110_vm0, %v533_v33, 0.0 }
 0x144   :  { %v2781_v27 = vpop.f32.mrb[32].mxu1 }
 0x145   :  { %v1089_v32 = vpop.f32.mrb[33].mxu1 }
 0x146   :  { %v2796_v36 = vpop.f32.mrb[34].mxu1  ;;  %624 = vadd.xlane.f32.xlu0 %v623_v63  ;;  %v635_v63 = vsel %vm110_vm0, %v547_v8, 0.0  ;;  %v638_v8 = vsel %vm110_vm0, %v548_v54, 0.0 }
 0x147   :  { %v1092_v41 = vpop.f32.mrb[35].mxu1  ;;  %579 = vadd.xlane.f32.xlu1 %v578_v37  ;;  %v590_v37 = vsel %vm110_vm0, %v532_v24, 0.0 }
 0x148   :  { %v2900_v33 = vadd.f32 %v2635_v40, %v1092_v41 }
 0x14a   :  { %630 = vadd.xlane.f32.xlu0 %v629_v43  ;;  %v2868_v43 = vadd.f32 %v2635_v40, %v1089_v32 }
 0x14b   :  { %585 = vadd.xlane.f32.xlu1 %v584_v50  ;;  %v2875_v50 = vadd.f32 %v2673_v7, %v2635_v40  ;;  %v2889_v7 = vadd.f32 %v2763_v15, %v2635_v40 }
 0x14c   :  { %v2815_v1 = vpop.f32.mrb[36].mxu1  ;;  %3688 = vst [vmem:[#allocation12_spill] sm:$0xff] %v2868_v43  ;;  %v1216_v9 = vmul.f32 %v2868_v43, %v2868_v43 }
 0x14d   :  { %v2820_v57 = vpop.f32.mrb[37].mxu1 }
 0x14e   :  { %v2827_v60 = vpop.f32.mrb[38].mxu1  ;;  %588 = vadd.xlane.f32.xlu0 %v587_v52 }
 0x14f   :  { %v2832_v12 = vpop.f32.mrb[39].mxu1  ;;  %627 = vadd.xlane.f32.xlu1 %v626_v62  ;;  %v641_v62 = vsel %vm110_vm0, %v549_v20, 0.0 }
 0x152   :  { %158 = vadd.xlane.f32.xlu0 %v157_v61 }
 0x153   :  { %633 = vadd.xlane.f32.xlu1 %v632_v23  ;;  %v534_v23 = vmul.f32 %v2875_v50, %v2875_v50 }
 0x154   :  { %v2847_v25 = vpop.f32.mrb[40].mxu1 }
 0x155   :  { %v2852_v4 = vpop.f32.mrb[41].mxu1  ;;  %v596_v15 = vsel %vm110_vm0, %v534_v23, 0.0 }
 0x156   :  { %v2860_v28 = vpop.f32.mrb[42].mxu1  ;;  %636 = vadd.xlane.f32.xlu0 %v635_v63  ;;  %v1248_v63 = vsel %vm110_vm0, %v1216_v9, 0.0 }
 0x157   :  { %v2865_v2 = vpop.f32.mrb[43].mxu1  ;;  %591 = vadd.xlane.f32.xlu1 %v590_v37  ;;  %v550_v37 = vmul.f32 %v2889_v7, %v2889_v7 }
 0x159   :  { %v644_v41 = vsel %vm110_vm0, %v550_v37, 0.0 }
 0x15a   :  { %594 = vadd.xlane.f32.xlu0 %v593_v47  ;;  %v2907_v47 = vadd.f32 %v2781_v27, %v2635_v40  ;;  %v2922_v27 = vadd.f32 %v2796_v36, %v2635_v40 }
 0x15b   :  { %161 = vadd.xlane.f32.xlu1 %v160_v53 }
 0x15c   :  { %v2880_v52 = vpop.f32.mrb[44].mxu1  ;;  %3689 = vst [vmem:[#allocation13_spill] sm:$0xff] %v2907_v47  ;;  %3691 = vst [vmem:[#allocation15_spill] sm:$0xff] %v2922_v27  ;;  %v1219_v36 = vmul.f32 %v2922_v27, %v2922_v27 }
 0x15d   :  { %v2882_v32 = vpop.f32.mrb[45].mxu1 }
 0x15e   :  { %v2891_v61 = vpop.f32.mrb[46].mxu1  ;;  %642 = vadd.xlane.f32.xlu0 %v641_v62  ;;  %v1217_v62 = vmul.f32 %v2900_v33, %v2900_v33  ;;  %v1257_v27 = vsel %vm110_vm0, %v1219_v36, 0.0  ;;  %v2963_v36 = vadd.f32 %v2815_v1, %v2635_v40  ;;  %v2975_v1 = vadd.f32 %v2827_v60, %v2635_v40 }
 0x15f   :  { %v2896_v24 = vpop.f32.mrb[47].mxu1  ;;  %639 = vadd.xlane.f32.xlu1 %v638_v8 }
 0x160   :  { %3697 = vst [vmem:[#allocation21_spill] sm:$0xff] %v2963_v36  ;;  %3699 = vst [vmem:[#allocation23_spill] sm:$0xff] %v2975_v1  ;;  %v1223_v60 = vmul.f32 %v2975_v1, %v2975_v1 }
 0x162   :  { %1249 = vadd.xlane.f32.xlu0 %v1248_v63  ;;  %v1218_v63 = vmul.f32 %v2907_v47, %v2907_v47  ;;  %v1269_v1 = vsel %vm110_vm0, %v1223_v60, 0.0 }
 0x163   :  { %597 = vadd.xlane.f32.xlu1 %v596_v15 }
 0x164   :  { %v2152_v39 = vpop.f32.mrb[48].mxu1 }
 0x165   :  { %v1153_v20 = vpop.f32.mrb[49].mxu1  ;;  %v2927_v15 = vadd.f32 %v2152_v39, %v2635_v40  ;;  %v2938_v39 = vadd.f32 %v2635_v40, %v2820_v57  ;;  %v2952_v57 = vadd.f32 %v2635_v40, %v2832_v12 }
 0x166   :  { %v2910_v53 = vadd.f32 %v2635_v40, %v1153_v20  ;;  %v2153_v54 = vpop.f32.mrb[50].mxu1  ;;  %v1251_v20 = vsel %vm110_vm0, %v1217_v62, 0.0 }
 0x167   :  { %v1156_v9 = vpop.f32.mrb[51].mxu1  ;;  %645 = vadd.xlane.f32.xlu1 %v644_v41  ;;  %3692 = vst [vmem:[#allocation16_spill] sm:$0xff] %v2927_v15  ;;  %3693 = vst [vmem:[#allocation17_spill] sm:$0xff] %v2938_v39 }
 0x168   :  { %3690 = vst [vmem:[#allocation14_spill] sm:$0xff] %v2910_v53  ;;  %v2916_v8 = vadd.f32 %v2635_v40, %v1156_v9  ;;  %v1232_v23 = vmul.f32 %v2910_v53, %v2910_v53  ;;  %v1254_v53 = vsel %vm110_vm0, %v1218_v63, 0.0  ;;  %3696 = vst [vmem:[#allocation20_spill] sm:$0xff] %v2952_v57 }
 0x16a   :  { %v1296_v37 = vsel %vm110_vm0, %v1232_v23, 0.0  ;;  %v1233_v41 = vmul.f32 %v2916_v8, %v2916_v8  ;;  %v2941_v23 = vadd.f32 %v2153_v54, %v2635_v40 }
 0x16b   :  { %1297 = vadd.xlane.f32.xlu0 %v1296_v37  ;;  %1252 = vadd.xlane.f32.xlu1 %v1251_v20  ;;  %v1234_v37 = vmul.f32 %v2927_v15, %v2927_v15 }
 0x16c   :  { %v2156_v9 = vpop.f32.mrb[52].mxu1  ;;  %3694 = vst [vmem:[#allocation18_spill] sm:$0xff] %v2941_v23  ;;  %v1299_v62 = vsel %vm110_vm0, %v1233_v41, 0.0  ;;  %v1220_v41 = vmul.f32 %v2938_v39, %v2938_v39  ;;  %v1235_v15 = vmul.f32 %v2941_v23, %v2941_v23 }
 0x16d   :  { %v1169_v43 = vpop.f32.mrb[53].mxu1  ;;  %v1302_v54 = vsel %vm110_vm0, %v1234_v37, 0.0 }
 0x16e   :  { %v2157_v20 = vpop.f32.mrb[54].mxu1  ;;  %v2947_v47 = vadd.f32 %v2635_v40, %v1169_v43  ;;  %v1260_v37 = vsel %vm110_vm0, %v1220_v41, 0.0  ;;  %v1305_v39 = vsel %vm110_vm0, %v1235_v15, 0.0  ;;  %v2980_v41 = vadd.f32 %v2156_v9, %v2635_v40 }
 0x16f   :  { %1255 = vadd.xlane.f32.xlu0 %v1254_v53  ;;  %1300 = vadd.xlane.f32.xlu1 %v1299_v62  ;;  %v1172_v63 = vpop.f32.mrb[55].mxu1  ;;  %v2995_v9 = vadd.f32 %v2157_v20, %v2635_v40 }
 0x170   :  { %3695 = vst [vmem:[#allocation19_spill] sm:$0xff] %v2947_v47  ;;  %v1236_v43 = vmul.f32 %v2947_v47, %v2947_v47  ;;  %v2966_v62 = vadd.f32 %v2635_v40, %v1172_v63  ;;  %v1222_v63 = vmul.f32 %v2963_v36, %v2963_v36  ;;  %3700 = vst [vmem:[#allocation24_spill] sm:$0xff] %v2980_v41 }
 0x171   :  { %v2992_v36 = vadd.f32 %v2635_v40, %v2852_v4  ;;  %v3006_v4 = vadd.f32 %v2635_v40, %v2865_v2 }
 0x172   :  { %3698 = vst [vmem:[#allocation22_spill] sm:$0xff] %v2966_v62  ;;  %v1308_v23 = vsel %vm110_vm0, %v1236_v43, 0.0  ;;  %v1266_v43 = vsel %vm110_vm0, %v1222_v63, 0.0 }
 0x173   :  { %1303 = vadd.xlane.f32.xlu0 %v1302_v54  ;;  %1258 = vadd.xlane.f32.xlu1 %v1257_v27  ;;  %v1221_v54 = vmul.f32 %v2952_v57, %v2952_v57  ;;  %v1237_v57 = vmul.f32 %v2966_v62, %v2966_v62 }
 0x174   :  { %v2160_v53 = vpop.f32.mrb[56].mxu1 }
 0x175   :  { %v1185_v12 = vpop.f32.mrb[57].mxu1  ;;  %v1263_v15 = vsel %vm110_vm0, %v1221_v54, 0.0  ;;  %v1311_v54 = vsel %vm110_vm0, %v1237_v57, 0.0  ;;  %v1224_v57 = vmul.f32 %v2992_v36, %v2992_v36 }
 0x176   :  { %v2161_v27 = vpop.f32.mrb[58].mxu1  ;;  %v3001_v62 = vadd.f32 %v2635_v40, %v1185_v12 }
 0x177   :  { %1261 = vadd.xlane.f32.xlu0 %v1260_v37  ;;  %1306 = vadd.xlane.f32.xlu1 %v1305_v39  ;;  %v1188_v47 = vpop.f32.mrb[59].mxu1  ;;  %v1272_v60 = vsel %vm110_vm0, %v1224_v57, 0.0 }
 0x178   :  { %v1240_v12 = vmul.f32 %v3001_v62, %v3001_v62  ;;  %v3020_v2 = vadd.f32 %v2635_v40, %v1188_v47  ;;  %v3034_v47 = vadd.f32 %v2160_v53, %v2635_v40 }
 0x17a   :  { %3703 = vst [vmem:[#allocation27_spill] sm:$0xff] %v3034_v47 }
 0x17b   :  { %1309 = vadd.xlane.f32.xlu0 %v1308_v23  ;;  %1264 = vadd.xlane.f32.xlu1 %v1263_v15  ;;  %v1238_v23 = vmul.f32 %v2980_v41, %v2980_v41  ;;  %v1239_v41 = vmul.f32 %v2995_v9, %v2995_v9 }
 0x17c   :  { %v2985_v39 = vpop.f32.mrb[60].mxu1 }
 0x17d   :  { %v1201_v37 = vpop.f32.mrb[61].mxu1  ;;  %v1314_v20 = vsel %vm110_vm0, %v1238_v23, 0.0  ;;  %v1225_v23 = vmul.f32 %v3006_v4, %v3006_v4 }
 0x17e   :  { %v2165_v15 = vpop.f32.mrb[62].mxu1 }
 0x17f   :  { %1267 = vadd.xlane.f32.xlu0 %v1266_v43  ;;  %1312 = vadd.xlane.f32.xlu1 %v1311_v54  ;;  %v1204_v63 = vpop.f32.mrb[63].mxu1  ;;  %v3017_v43 = vadd.f32 %v2847_v25, %v2635_v40  ;;  %v1317_v54 = vsel %vm110_vm0, %v1239_v41, 0.0  ;;  %v1275_v57 = vsel %vm110_vm0, %v1225_v23, 0.0  ;;  %v1241_v41 = vmul.f32 %v3020_v2, %v3020_v2 }
 0x180   :  { %v1242_v23 = vmul.f32 %v3034_v47, %v3034_v47 }
 0x181   :  { %3701 = vst [vmem:[#allocation25_spill] sm:$0xff] %v3017_v43  ;;  %v1226_v25 = vmul.f32 %v3017_v43, %v3017_v43  ;;  %v1323_v53 = vsel %vm110_vm0, %v1241_v41, 0.0 }
 0x183   :  { %1315 = vadd.xlane.f32.xlu0 %v1314_v20  ;;  %1270 = vadd.xlane.f32.xlu1 %v1269_v1  ;;  %v1320_v1 = vsel %vm110_vm0, %v1240_v12, 0.0  ;;  %v3029_v20 = vadd.f32 %v2860_v28, %v2635_v40  ;;  %v3044_v28 = vadd.f32 %v2635_v40, %v2882_v32  ;;  %v1326_v32 = vsel %vm110_vm0, %v1242_v23, 0.0 }
 0x185   :  { %3702 = vst [vmem:[#allocation26_spill] sm:$0xff] %v3029_v20  ;;  %v1227_v12 = vmul.f32 %v3029_v20, %v3029_v20  ;;  %3704 = vst [vmem:[#allocation28_spill] sm:$0xff] %v3044_v28 }
 0x187   :  { %1273 = vadd.xlane.f32.xlu0 %v1272_v60  ;;  %1318 = vadd.xlane.f32.xlu1 %v1317_v54  ;;  %v1278_v60 = vsel %vm110_vm0, %v1226_v25, 0.0  ;;  %v3047_v54 = vadd.f32 %v2161_v27, %v2635_v40  ;;  %v1281_v25 = vsel %vm110_vm0, %v1227_v12, 0.0  ;;  %v1228_v27 = vmul.f32 %v3044_v28, %v3044_v28 }
 0x189   :  { %3705 = vst [vmem:[#allocation29_spill] sm:$0xff] %v3047_v54  ;;  %v1243_v41 = vmul.f32 %v3047_v54, %v3047_v54  ;;  %v1284_v12 = vsel %vm110_vm0, %v1228_v27, 0.0 }
 0x18b   :  { %1321 = vadd.xlane.f32.xlu0 %v1320_v1  ;;  %1276 = vadd.xlane.f32.xlu1 %v1275_v57  ;;  %v3053_v1 = vadd.f32 %v2635_v40, %v1201_v37  ;;  %v3058_v57 = vadd.f32 %v2635_v40, %v2896_v24  ;;  %v3072_v24 = vadd.f32 %v2635_v40, %v1204_v63 }
 0x18c   :  { %v3087_v63 = vadd.f32 %v2985_v39, %v2635_v40 }
 0x18d   :  { %3706 = vst [vmem:[#allocation30_spill] sm:$0xff] %v3053_v1  ;;  %3707 = vst [vmem:[#allocation31_spill] sm:$0xff] %v3058_v57  ;;  %v1244_v37 = vmul.f32 %v3053_v1, %v3053_v1  ;;  %v1229_v23 = vmul.f32 %v3058_v57, %v3058_v57 }
 0x18e   :  { %3709 = vst [vmem:[#allocation33_spill] sm:$0xff] %v3072_v24  ;;  %3711 = vst [vmem:[#allocation35_spill] sm:$0xff] %v3087_v63 }
 0x18f   :  { %1279 = vadd.xlane.f32.xlu0 %v1278_v60  ;;  %1324 = vadd.xlane.f32.xlu1 %v1323_v53  ;;  %v3069_v60 = vadd.f32 %v2880_v52, %v2635_v40  ;;  %v1329_v53 = vsel %vm110_vm0, %v1243_v41, 0.0  ;;  %v3083_v52 = vadd.f32 %v2891_v61, %v2635_v40  ;;  %v1287_v27 = vsel %vm110_vm0, %v1229_v23, 0.0 }
 0x190   :  { %v1245_v41 = vmul.f32 %v3072_v24, %v3072_v24  ;;  %v1246_v61 = vmul.f32 %v3087_v63, %v3087_v63 }
 0x191   :  { %3708 = vst [vmem:[#allocation32_spill] sm:$0xff] %v3069_v60  ;;  %3710 = vst [vmem:[#allocation34_spill] sm:$0xff] %v3083_v52  ;;  %v1231_v39 = vmul.f32 %v3083_v52, %v3083_v52 }
 0x192   :  { %v1338_v23 = vsel %vm110_vm0, %v1246_v61, 0.0 }
 0x193   :  { %1327 = vadd.xlane.f32.xlu0 %v1326_v32  ;;  %1282 = vadd.xlane.f32.xlu1 %v1281_v25  ;;  %v1332_v25 = vsel %vm110_vm0, %v1244_v37, 0.0  ;;  %v1230_v32 = vmul.f32 %v3069_v60, %v3069_v60 }
 0x195   :  { %v1290_v37 = vsel %vm110_vm0, %v1230_v32, 0.0 }
 0x197   :  { %1285 = vadd.xlane.f32.xlu0 %v1284_v12  ;;  %1330 = vadd.xlane.f32.xlu1 %v1329_v53  ;;  %v3094_v12 = vadd.f32 %v2165_v15, %v2635_v40  ;;  %v1335_v53 = vsel %vm110_vm0, %v1245_v41, 0.0  ;;  %v559_v40 = vpop.xlane.xlu0 %558 }
 0x199   :  { %3712 = vst [vmem:[#allocation36_spill] sm:$0xff] %v3094_v12  ;;  %v1247_v32 = vmul.f32 %v3094_v12, %v3094_v12  ;;  %v562_v63 = vpop.xlane.xlu1 %561 }
 0x19a   :  { %v650_v24 = vmax.f32 %v562_v63, 1e-16 }
 0x19b   :  { %1333 = vadd.xlane.f32.xlu0 %v1332_v25  ;;  %1288 = vadd.xlane.f32.xlu1 %v1287_v27  ;;  %v1293_v25 = vsel %vm110_vm0, %v1231_v39, 0.0  ;;  %v1341_v15 = vsel %vm110_vm0, %v1247_v32, 0.0  ;;  %v553_v27 = vpop.xlane.xlu0 %552 }
 0x19c   :  { %v647_v52 = vmax.f32 %v553_v27, 1e-16 }
 0x19f   :  { %1291 = vadd.xlane.f32.xlu0 %v1290_v37  ;;  %1336 = vadd.xlane.f32.xlu1 %v1335_v53  ;;  %v556_v41 = vpop.xlane.xlu0 %555 }
 0x1a0   :  { %v648_v60 = vmax.f32 %v556_v41, 1e-16 }
 0x1a2   :  { %2227 = vrsqrt.f32 %v648_v60 }
 0x1a3   :  { %1339 = vadd.xlane.f32.xlu0 %v1338_v23  ;;  %1294 = vadd.xlane.f32.xlu1 %v1293_v25  ;;  %2229 = vrsqrt.f32 %v647_v52  ;;  %v649_v25 = vmax.f32 %v559_v40, 1e-16 }
 0x1a7   :  { %1342 = vadd.xlane.f32.xlu1 %v1341_v15 }
 0x1ac   :  { %v2228_v27 = vpop.eup %2227 }
 0x1ad   :  { %v712_v63 = vmul.f32 %v2228_v27, %v2649_v49 }
 0x1b7   :  { %v607_v37 = vpop.xlane.xlu0 %606 }
 0x1b8   :  { %v601_v53 = vpop.xlane.xlu1 %600  ;;  %v665_v12 = vmax.f32 %v607_v37, 1e-16 }
 0x1b9   :  { %v663_v61 = vmax.f32 %v601_v53, 1e-16  ;;  %v2230_v53 = vpop.eup %2229 }
 0x1ba   :  { %v711_v40 = vmul.f32 %v2230_v53, %v2641_v44 }
 0x1bb   :  { %v565_v39 = vpop.xlane.xlu0 %564  ;;  %2231 = vrsqrt.f32 %v663_v61 }
 0x1bc   :  { %v604_v1 = vpop.xlane.xlu1 %603  ;;  %v651_v37 = vmax.f32 %v565_v39, 1e-16 }
 0x1bd   :  { %v664_v23 = vmax.f32 %v604_v1, 1e-16 }
 0x1bf   :  { %2233 = vrsqrt.f32 %v664_v23  ;;  %v571_v32 = vpop.xlane.xlu0 %570 }
 0x1c0   :  { %2235 = vrsqrt.f32 %v650_v24  ;;  %v610_v15 = vpop.xlane.xlu1 %609  ;;  %v653_v53 = vmax.f32 %v571_v32, 1e-16 }
 0x1c1   :  { %2237 = vrsqrt.f32 %v665_v12  ;;  %v666_v28 = vmax.f32 %v610_v15, 1e-16  ;;  %v743_v15 = vpack.c.bf16 %v712_v63, %v711_v40 }
 0x1c2   :  { %2239 = vrsqrt.f32 %v649_v25 }
 0x1c3   :  { %2241 = vrsqrt.f32 %v666_v28  ;;  %v613_v41 = vpop.xlane.xlu0 %612 }
 0x1c4   :  { %v568_v60 = vpop.xlane.xlu1 %567  ;;  %v667_v24 = vmax.f32 %v613_v41, 1e-16 }
 0x1c5   :  { %v652_v52 = vmax.f32 %v568_v60, 1e-16  ;;  %v2232_v57 = vpop.eup %2231 }
 0x1c6   :  { %v727_v25 = vmul.f32 %v2232_v57, %v2684_v13  ;;  %v776_v13 = vsel %vm110_vm0, %v743_v15, 0 }
 0x1c7   :  { %v619_v61 = vpop.xlane.xlu0 %618  ;;  %2243 = vrsqrt.f32 %v652_v52 }
 0x1c8   :  { %v574_v1 = vpop.xlane.xlu1 %573  ;;  %2245 = vrsqrt.f32 %v651_v37  ;;  %v669_v49 = vmax.f32 %v619_v61, 1e-16 }
 0x1c9   :  { %v2234_v23 = vpop.eup %2233  ;;  %2247 = vrsqrt.f32 %v667_v24  ;;  %v654_v20 = vmax.f32 %v574_v1, 1e-16 }
 0x1ca   :  { %v2236_v12 = vpop.eup %2235  ;;  %v728_v28 = vmul.f32 %v2234_v23, %v2689_v17 }
 0x1cb   :  { %v2238_v54 = vpop.eup %2237  ;;  %v577_v60 = vpop.xlane.xlu0 %576  ;;  %v714_v41 = vmul.f32 %v2236_v12, %v2644_v46 }
 0x1cc   :  { %v2240_v47 = vpop.eup %2239  ;;  %v616_v27 = vpop.xlane.xlu1 %615  ;;  %v751_v39 = vpack.c.bf16 %v728_v28, %v727_v25  ;;  %v729_v17 = vmul.f32 %v2238_v54, %v2681_v11  ;;  %v655_v12 = vmax.f32 %v577_v60, 1e-16 }
 0x1cd   :  { %v2242_v43 = vpop.eup %2241  ;;  %v668_v44 = vmax.f32 %v616_v27, 1e-16  ;;  %v713_v61 = vmul.f32 %v2240_v47, %v2638_v42 }
 0x1ce   :  { %2166 = vmatprep.subr.msk.bf16.mxu0 %vm110_vm0, %v751_v39  ;;  %v730_v57 = vmul.f32 %v2242_v43, %v2700_v22 }
 0x1cf   :  { %2249 = vrsqrt.f32 %v668_v44  ;;  %v583_v52 = vpop.xlane.xlu0 %582  ;;  %2033 = vmatpush3.bf16.xpose.msra.mxu0 %v776_v13  ;;  %v744_v46 = vpack.c.bf16 %v714_v41, %v713_v61 }
 0x1d0   :  { %2251 = vrsqrt.f32 %v669_v49  ;;  %v622_v63 = vpop.xlane.xlu1 %621  ;;  %v752_v37 = vpack.c.bf16 %v730_v57, %v729_v17  ;;  %v657_v57 = vmax.f32 %v583_v52, 1e-16 }
 0x1d1   :  { %2253 = vrsqrt.f32 %v654_v20  ;;  %v670_v1 = vmax.f32 %v622_v63, 1e-16  ;;  %v2244_v32 = vpop.eup %2243  ;;  %v779_v43 = vsel %vm110_vm0, %v744_v46, 0 }
 0x1d2   :  { %2255 = vrsqrt.f32 %v653_v53  ;;  %2167 = vmatprep.subr.msk.bf16.mxu0 %vm110_vm0, %v752_v37  ;;  %v2246_v54 = vpop.eup %2245  ;;  %v716_v23 = vmul.f32 %v2244_v32, %v2709_v29 }
 0x1d3   :  { %2257 = vrsqrt.f32 %v670_v1  ;;  %v625_v40 = vpop.xlane.xlu0 %624  ;;  %v2248_v24 = vpop.eup %2247  ;;  %v715_v20 = vmul.f32 %v2246_v54, %v2678_v10 }
 0x1d4   :  { %v580_v11 = vpop.xlane.xlu1 %579  ;;  %v671_v28 = vmax.f32 %v625_v40, 1e-16  ;;  %v731_v49 = vmul.f32 %v2248_v24, %v2712_v30 }
 0x1d5   :  { %v656_v22 = vmax.f32 %v580_v11, 1e-16  ;;  %v745_v39 = vpack.c.bf16 %v716_v23, %v715_v20 }
 0x1d7   :  { %v631_v25 = vpop.xlane.xlu0 %630  ;;  %2035 = vmatpush3.bf16.xpose.msra.mxu0 %v779_v43  ;;  %2259 = vrsqrt.f32 %v656_v22  ;;  %v782_v37 = vsel %vm110_vm0, %v745_v39, 0 }
 0x1d8   :  { %v586_v42 = vpop.xlane.xlu1 %585  ;;  %2261 = vrsqrt.f32 %v655_v12  ;;  %v673_v53 = vmax.f32 %v631_v25, 1e-16 }
 0x1d9   :  { %v2250_v47 = vpop.eup %2249  ;;  %2263 = vrsqrt.f32 %v671_v28  ;;  %v658_v10 = vmax.f32 %v586_v42, 1e-16 }
 0x1da   :  { %v2252_v15 = vpop.eup %2251  ;;  %v732_v27 = vmul.f32 %v2250_v47, %v2736_v51 }
 0x1db   :  { %v2254_v44 = vpop.eup %2253  ;;  %v589_v41 = vpop.xlane.xlu0 %588  ;;  %v733_v30 = vmul.f32 %v2252_v15, %v2718_v35 }
 0x1dc   :  { %v2256_v29 = vpop.eup %2255  ;;  %v628_v60 = vpop.xlane.xlu1 %627  ;;  %v753_v13 = vpack.c.bf16 %v732_v27, %v731_v49  ;;  %v718_v61 = vmul.f32 %v2254_v44, %v2724_v38  ;;  %v659_v23 = vmax.f32 %v589_v41, 1e-16 }
 0x1dd   :  { %v2258_v17 = vpop.eup %2257  ;;  %v672_v63 = vmax.f32 %v628_v60, 1e-16  ;;  %v717_v52 = vmul.f32 %v2256_v29, %v2694_v19 }
 0x1de   :  { %2168 = vmatprep.subr.msk.bf16.mxu0 %vm110_vm0, %v753_v13  ;;  %v734_v51 = vmul.f32 %v2258_v17, %v2748_v59 }
 0x1df   :  { %2265 = vrsqrt.f32 %v672_v63  ;;  %2037 = vmatpush3.bf16.xpose.msra.mxu0 %v782_v37  ;;  %v159_v1 = vpop.xlane.xlu0 %158  ;;  %v746_v11 = vpack.c.bf16 %v718_v61, %v717_v52 }
 0x1e0   :  { %2267 = vrsqrt.f32 %v673_v53  ;;  %v634_v46 = vpop.xlane.xlu1 %633  ;;  %v754_v32 = vpack.c.bf16 %v734_v51, %v733_v30  ;;  %v163_v59 = vmax.f32 %v159_v1, 1e-16 }
 0x1e1   :  { %2269 = vrsqrt.f32 %v658_v10  ;;  %v674_v40 = vmax.f32 %v634_v46, 1e-16  ;;  %v2260_v54 = vpop.eup %2259  ;;  %v785_v24 = vsel %vm110_vm0, %v746_v11, 0 }
 0x1e2   :  { %2271 = vrsqrt.f32 %v657_v57  ;;  %2169 = vmatprep.subr.msk.bf16.mxu0 %vm110_vm0, %v754_v32  ;;  %v2262_v38 = vpop.eup %2261  ;;  %v720_v12 = vmul.f32 %v2260_v54, %v2761_v14 }
 0x1e3   :  { %2273 = vrsqrt.f32 %v674_v40  ;;  %v637_v35 = vpop.xlane.xlu0 %636  ;;  %v2264_v25 = vpop.eup %2263  ;;  %v719_v20 = vmul.f32 %v2262_v38, %v2730_v45 }
 0x1e4   :  { %v592_v22 = vpop.xlane.xlu1 %591  ;;  %2275 = vrsqrt.f32 %v163_v59  ;;  %v675_v28 = vmax.f32 %v637_v35, 1e-16  ;;  %v735_v27 = vmul.f32 %v2264_v25, %v2754_v5 }
 0x1e5   :  { %v660_v43 = vmax.f32 %v592_v22, 1e-16  ;;  %v747_v44 = vpack.c.bf16 %v720_v12, %v719_v20 }
 0x1e7   :  { %2039 = vmatpush3.bf16.xpose.msra.mxu0 %v785_v24  ;;  %v595_v19 = vpop.xlane.xlu0 %594  ;;  %2277 = vrsqrt.f32 %v660_v43  ;;  %v788_v10 = vsel %vm110_vm0, %v747_v44, 0 }
 0x1e8   :  { %v162_v42 = vpop.xlane.xlu1 %161  ;;  %2279 = vrsqrt.f32 %v659_v23  ;;  %v661_v17 = vmax.f32 %v595_v19, 1e-16 }
 0x1e9   :  { %v2266_v47 = vpop.eup %2265  ;;  %v164_v15 = vmax.f32 %v162_v42, 1e-16 }
 0x1ea   :  { %v2268_v49 = vpop.eup %2267  ;;  %v736_v39 = vmul.f32 %v2266_v47, %v2794_v34 }
 0x1eb   :  { %v2270_v41 = vpop.eup %2269  ;;  %2281 = vrsqrt.f32 %v164_v15  ;;  %v737_v45 = vmul.f32 %v2268_v49, %v2769_v21  ;;  %v643_v57 = vpop.xlane.xlu0 %642 }
 0x1ec   :  { %v2272_v14 = vpop.eup %2271  ;;  %v640_v29 = vpop.xlane.xlu1 %639  ;;  %v755_v53 = vpack.c.bf16 %v736_v39, %v735_v27  ;;  %2283 = vrsqrt.f32 %v675_v28  ;;  %v722_v34 = vmul.f32 %v2270_v41, %v2776_v0  ;;  %v677_v51 = vmax.f32 %v643_v57, 1e-16 }
 0x1ed   :  { %v2274_v60 = vpop.eup %2273  ;;  %v676_v13 = vmax.f32 %v640_v29, 1e-16  ;;  %v721_v30 = vmul.f32 %v2272_v14, %v2742_v56 }
 0x1ee   :  { %2170 = vmatprep.subr.msk.bf16.mxu0 %vm110_vm0, %v755_v53  ;;  %v738_v5 = vmul.f32 %v2274_v60, %v2808_v48  ;;  %v2276_v1 = vpop.eup %2275 }
 0x1ef   :  { %2285 = vrsqrt.f32 %v676_v13  ;;  %2041 = vmatpush3.bf16.xpose.msra.mxu0 %v788_v10  ;;  %v748_v21 = vpack.c.bf16 %v722_v34, %v721_v30  ;;  %v1250_v52 = vpop.xlane.xlu0 %1249  ;;  %v167_v11 = vmul.f32 %v2276_v1, %v2802_v6  ;;  %v3713_v1 = vld [vmem:[#allocation12_spill] sm:$0xff] }
 0x1f0   :  { %v598_v63 = vpop.xlane.xlu1 %597  ;;  %v756_v37 = vpack.c.bf16 %v738_v5, %v737_v45  ;;  %2287 = vrsqrt.f32 %v661_v17  ;;  %v1344_v22 = vmax.f32 %v1250_v52, 1e-16 }
 0x1f1   :  { %v662_v61 = vmax.f32 %v598_v63, 1e-16  ;;  %v2278_v46 = vpop.eup %2277  ;;  %v791_v56 = vsel %vm110_vm0, %v748_v21, 0 }
 0x1f2   :  { %2171 = vmatprep.subr.msk.bf16.mxu0 %vm110_vm0, %v756_v37  ;;  %v2280_v32 = vpop.eup %2279  ;;  %v724_v35 = vmul.f32 %v2278_v46, %v2825_v58 }
 0x1f3   :  { %2289 = vrsqrt.f32 %v662_v61  ;;  %v723_v24 = vmul.f32 %v2280_v32, %v2788_v31 }
 0x1f4   :  { %v646_v48 = vpop.xlane.xlu1 %645  ;;  %2291 = vrsqrt.f32 %v677_v51 }
 0x1f5   :  { %v2282_v40 = vpop.eup %2281  ;;  %v678_v0 = vmax.f32 %v646_v48, 1e-16  ;;  %v749_v42 = vpack.c.bf16 %v724_v35, %v723_v24  ;;  %v3714_v48 = vld [vmem:[#allocation14_spill] sm:$0xff] }
 0x1f6   :  { %v168_v54 = vmul.f32 %v2282_v40, %v2842_v18  ;;  %v2284_v59 = vpop.eup %2283 }
 0x1f7   :  { %2293 = vrsqrt.f32 %v678_v0  ;;  %2043 = vmatpush3.bf16.xpose.msra.mxu0 %v791_v56  ;;  %v739_v18 = vmul.f32 %v2284_v59, %v2818_v55  ;;  %v794_v31 = vsel %vm110_vm0, %v749_v42, 0 }
 0x1f8   :  { %v169_v38 = vpack.c.bf16 %v168_v54, %v167_v11  ;;  %v1298_v43 = vpop.xlane.xlu0 %1297  ;;  %v1253_v23 = vpop.xlane.xlu1 %1252  ;;  %2295 = vrsqrt.f32 %v1344_v22 }
 0x1f9   :  { %v2286_v12 = vpop.eup %2285  ;;  %v1345_v25 = vmax.f32 %v1253_v23, 1e-16  ;;  %v1360_v6 = vmax.f32 %v1298_v43, 1e-16 }
 0x1fa   :  { %170 = vst.msk [vmem:[#allocation2] sm:$0xff] %vm110_vm0, %v169_v38  ;;  %v740_v19 = vmul.f32 %v2286_v12, %v2858_v3  ;;  %v2288_v58 = vpop.eup %2287 }
 0x1fb   :  { %2297 = vrsqrt.f32 %v1345_v25  ;;  %v725_v41 = vmul.f32 %v2288_v58, %v2837_v16 }
 0x1fc   :  { %v1256_v20 = vpop.xlane.xlu0 %1255  ;;  %v1301_v47 = vpop.xlane.xlu1 %1300  ;;  %v757_v28 = vpack.c.bf16 %v740_v19, %v739_v18  ;;  %2299 = vrsqrt.f32 %v1360_v6  ;;  %v3716_v19 = vld [vmem:[#allocation13_spill] sm:$0xff] }
 0x1fd   :  { %v2290_v15 = vpop.eup %2289  ;;  %v1361_v49 = vmax.f32 %v1301_v47, 1e-16  ;;  %v1346_v55 = vmax.f32 %v1256_v20, 1e-16  ;;  %v3717_v47 = vld [vmem:[#allocation16_spill] sm:$0xff] }
 0x1fe   :  { %2172 = vmatprep.subr.msk.bf16.mxu0 %vm110_vm0, %v757_v28  ;;  %v726_v27 = vmul.f32 %v2290_v15, %v2875_v50  ;;  %v2292_v39 = vpop.eup %2291  ;;  %v3718_v15 = vld [vmem:[#allocation18_spill] sm:$0xff] }
 0x1ff   :  { %2045 = vmatpush3.bf16.xpose.msra.mxu0 %v794_v31  ;;  %2301 = vrsqrt.f32 %v1361_v49  ;;  %v741_v13 = vmul.f32 %v2292_v39, %v2850_v26 }
 0x200   :  { %v1304_v3 = vpop.xlane.xlu0 %1303  ;;  %v1259_v44 = vpop.xlane.xlu1 %1258  ;;  %v750_v17 = vpack.c.bf16 %v726_v27, %v725_v41  ;;  %2303 = vrsqrt.f32 %v1346_v55 }
 0x201   :  { %v2294_v14 = vpop.eup %2293  ;;  %v1347_v29 = vmax.f32 %v1259_v44, 1e-16  ;;  %v759_v53 = vld [vmem:[#allocation2] sm:$0xf]  ;;  %v1362_v60 = vmax.f32 %v1304_v3, 1e-16 }
 0x202   :  { %2048 = vmatprep.mubr.msk.bf16.mxu0 %vm110_vm0, %v759_v53  ;;  %v742_v45 = vmul.f32 %v2294_v14, %v2889_v7  ;;  %v2296_v5 = vpop.eup %2295  ;;  %v797_v16 = vsel %vm110_vm0, %v750_v17, 0  ;;  %v3160_v52 = vld [vmem:[#allocation2] sm:$0xf0] }
 0x203   :  { %2305 = vrsqrt.f32 %v1347_v29  ;;  %v1408_v21 = vmul.f32 %v2296_v5, %v3713_v1  ;;  %v1471_v22 = vrot.slane %v3160_v52, 4 }
 0x204   :  { %v1262_v50 = vpop.xlane.xlu0 %1261  ;;  %v1307_v57 = vpop.xlane.xlu1 %1306  ;;  %v758_v10 = vpack.c.bf16 %v742_v45, %v741_v13  ;;  %2307 = vrsqrt.f32 %v1362_v60 }
 0x205   :  { %v1363_v34 = vmax.f32 %v1307_v57, 1e-16  ;;  %v2298_v63 = vpop.eup %2297  ;;  %v1348_v37 = vmax.f32 %v1262_v50, 1e-16  ;;  %v3720_v57 = vld [vmem:[#allocation17_spill] sm:$0xff] }
 0x206   :  { %2173 = vmatprep.subr.msk.bf16.mxu0 %vm110_vm0, %v758_v10  ;;  %v1409_v26 = vmul.f32 %v2298_v63, %v2900_v33  ;;  %v2300_v30 = vpop.eup %2299  ;;  %v3721_v63 = vld [vmem:[#allocation19_spill] sm:$0xff] }
 0x207   :  { %2047 = vmatpush3.bf16.xpose.msra.mxu0 %v797_v16  ;;  %2309 = vrsqrt.f32 %v1363_v34  ;;  %v1424_v40 = vmul.f32 %v2300_v30, %v3714_v48 }
 0x208   :  { %v1310_v7 = vpop.xlane.xlu0 %1309  ;;  %v1265_v51 = vpop.xlane.xlu1 %1264  ;;  %2311 = vrsqrt.f32 %v1348_v37  ;;  %v1440_v11 = vpack.c.bf16 %v1409_v26, %v1408_v21  ;;  %v3722_v37 = vld [vmem:[#allocation22_spill] sm:$0xff] }
 0x209   :  { %v1349_v61 = vmax.f32 %v1265_v51, 1e-16  ;;  %v2302_v46 = vpop.eup %2301  ;;  %v1364_v32 = vmax.f32 %v1310_v7, 1e-16 }
 0x20a   :  { %v1425_v0 = vmul.f32 %v2302_v46, %v2916_v8  ;;  %v2304_v56 = vpop.eup %2303  ;;  %v1476_v23 = vsel %vm110_vm0, %v1440_v11, 0  ;;  %v3715_v8 = vld [vmem:[#allocation15_spill] sm:$0xff] }
 0x20b   :  { %2313 = vrsqrt.f32 %v1349_v61  ;;  %v1410_v42 = vmul.f32 %v2304_v56, %v3716_v19 }
 0x20c   :  { %v1268_v54 = vpop.xlane.xlu0 %1267  ;;  %v1313_v33 = vpop.xlane.xlu1 %1312  ;;  %v1448_v59 = vpack.c.bf16 %v1425_v0, %v1424_v40  ;;  %2315 = vrsqrt.f32 %v1364_v32  ;;  %v3723_v40 = vld [vmem:[#allocation23_spill] sm:$0xff] }
 0x20d   :  { %v1365_v35 = vmax.f32 %v1313_v33, 1e-16  ;;  %v2306_v38 = vpop.eup %2305  ;;  %v1350_v43 = vmax.f32 %v1268_v54, 1e-16 }
 0x20e   :  { %2049 = vmatmul.mubr.msk.bf16.vlgmr.msra.gmra.mrb[4].mxu0 %vm110_vm0, %v759_v53  ;;  %2174 = vmatprep.subr.msk.bf16.mxu0 %vm110_vm0, %v1448_v59  ;;  %v1411_v24 = vmul.f32 %v2306_v38, %v3715_v8  ;;  %v2308_v12 = vpop.eup %2307  ;;  %v3719_v53 = vld [vmem:[#allocation20_spill] sm:$0xff] }
 0x20f   :  { %2084 = vmatprep.mubr.msk.bf16.mxu0 %vm110_vm0, %v1471_v22  ;;  %2317 = vrsqrt.f32 %v1365_v35  ;;  %2069 = vmatpush3.bf16.xpose.msra.mxu0 %v1476_v23  ;;  %v1426_v28 = vmul.f32 %v2308_v12, %v3717_v47  ;;  %v3724_v35 = vld [vmem:[#allocation21_spill] sm:$0xff]  ;;  %v3725_v23 = vld [vmem:[#allocation24_spill] sm:$0xff] }
 0x210   :  { %v1316_v25 = vpop.xlane.xlu0 %1315  ;;  %v1271_v6 = vpop.xlane.xlu1 %1270  ;;  %2319 = vrsqrt.f32 %v1350_v43  ;;  %v1441_v31 = vpack.c.bf16 %v1411_v24, %v1410_v42 }
 0x211   :  { %v1351_v18 = vmax.f32 %v1271_v6, 1e-16  ;;  %v2310_v58 = vpop.eup %2309  ;;  %v1366_v20 = vmax.f32 %v1316_v25, 1e-16 }
 0x212   :  { %v1427_v49 = vmul.f32 %v2310_v58, %v3718_v15  ;;  %v2312_v55 = vpop.eup %2311  ;;  %v1479_v29 = vsel %vm110_vm0, %v1441_v31, 0 }
 0x213   :  { %2321 = vrsqrt.f32 %v1351_v18  ;;  %v1412_v10 = vmul.f32 %v2312_v55, %v3720_v57 }
 0x214   :  { %v1274_v27 = vpop.xlane.xlu0 %1273  ;;  %v1319_v39 = vpop.xlane.xlu1 %1318  ;;  %v1449_v44 = vpack.c.bf16 %v1427_v49, %v1426_v28  ;;  %2323 = vrsqrt.f32 %v1366_v20 }
 0x215   :  { %v1367_v3 = vmax.f32 %v1319_v39, 1e-16  ;;  %v2314_v41 = vpop.eup %2313  ;;  %v1352_v14 = vmax.f32 %v1274_v27, 1e-16 }
 0x216   :  { %2175 = vmatprep.subr.msk.bf16.mxu0 %vm110_vm0, %v1449_v44  ;;  %v1413_v60 = vmul.f32 %v2314_v41, %v3719_v53  ;;  %v2316_v13 = vpop.eup %2315 }
 0x217   :  { %2325 = vrsqrt.f32 %v1367_v3  ;;  %2071 = vmatpush3.bf16.xpose.msra.mxu0 %v1479_v29  ;;  %v1428_v16 = vmul.f32 %v2316_v13, %v3721_v63 }
 0x218   :  { %v1322_v45 = vpop.xlane.xlu0 %1321  ;;  %v1277_v17 = vpop.xlane.xlu1 %1276  ;;  %2327 = vrsqrt.f32 %v1352_v14  ;;  %v1442_v30 = vpack.c.bf16 %v1413_v60, %v1412_v10 }
 0x219   :  { %v1353_v50 = vmax.f32 %v1277_v17, 1e-16  ;;  %v2318_v5 = vpop.eup %2317  ;;  %v1368_v34 = vmax.f32 %v1322_v45, 1e-16  ;;  %v3726_v17 = vld [vmem:[#allocation26_spill] sm:$0xff] }
 0x21a   :  { %v1429_v26 = vmul.f32 %v2318_v5, %v3722_v37  ;;  %v2320_v61 = vpop.eup %2319  ;;  %v1482_v48 = vsel %vm110_vm0, %v1442_v30, 0  ;;  %v3728_v37 = vld [vmem:[#allocation27_spill] sm:$0xff]  ;;  %v3729_v30 = vld [vmem:[#allocation29_spill] sm:$0xff] }
 0x21b   :  { %2329 = vrsqrt.f32 %v1353_v50  ;;  %v1414_v59 = vmul.f32 %v2320_v61, %v3724_v35  ;;  %v3732_v35 = vld [vmem:[#allocation30_spill] sm:$0xff] }
 0x21c   :  { %v1280_v7 = vpop.xlane.xlu0 %1279  ;;  %v1325_v51 = vpop.xlane.xlu1 %1324  ;;  %v1450_v21 = vpack.c.bf16 %v1429_v26, %v1428_v16  ;;  %2331 = vrsqrt.f32 %v1368_v34  ;;  %v3727_v34 = vld [vmem:[#allocation25_spill] sm:$0xff] }
 0x21d   :  { %v1369_v1 = vmax.f32 %v1325_v51, 1e-16  ;;  %v2322_v46 = vpop.eup %2321  ;;  %v1354_v32 = vmax.f32 %v1280_v7, 1e-16 }
 0x21e   :  { %2176 = vmatprep.subr.msk.bf16.mxu0 %vm110_vm0, %v1450_v21  ;;  %v1415_v0 = vmul.f32 %v2322_v46, %v3723_v40  ;;  %v2324_v11 = vpop.eup %2323  ;;  %v3730_v40 = vld [vmem:[#allocation31_spill] sm:$0xff] }
 0x21f   :  { %2333 = vrsqrt.f32 %v1369_v1  ;;  %2073 = vmatpush3.bf16.xpose.msra.mxu0 %v1482_v48  ;;  %v1430_v8 = vmul.f32 %v2324_v11, %v3725_v23 }
 0x220   :  { %v1328_v54 = vpop.xlane.xlu0 %1327  ;;  %v1283_v33 = vpop.xlane.xlu1 %1282  ;;  %2335 = vrsqrt.f32 %v1354_v32  ;;  %v1443_v12 = vpack.c.bf16 %v1415_v0, %v1414_v59 }
 0x221   :  { %v1355_v56 = vmax.f32 %v1283_v33, 1e-16  ;;  %v2326_v38 = vpop.eup %2325  ;;  %v1370_v43 = vmax.f32 %v1328_v54, 1e-16  ;;  %v3731_v54 = vld [vmem:[#allocation28_spill] sm:$0xff] }
 0x222   :  { %v1431_v24 = vmul.f32 %v2326_v38, %v2995_v9  ;;  %v2328_v18 = vpop.eup %2327  ;;  %v1485_v47 = vsel %vm110_vm0, %v1443_v12, 0  ;;  %v3733_v38 = vld [vmem:[#allocation33_spill] sm:$0xff] }
 0x223   :  { %2337 = vrsqrt.f32 %v1355_v56  ;;  %v1416_v27 = vmul.f32 %v2328_v18, %v2992_v36  ;;  %v3734_v18 = vld [vmem:[#allocation34_spill] sm:$0xff] }
 0x224   :  { %v1286_v25 = vpop.xlane.xlu0 %1285  ;;  %v1331_v6 = vpop.xlane.xlu1 %1330  ;;  %v1451_v42 = vpack.c.bf16 %v1431_v24, %v1430_v8  ;;  %2339 = vrsqrt.f32 %v1370_v43 }
 0x225   :  { %v1371_v19 = vmax.f32 %v1331_v6, 1e-16  ;;  %v2330_v58 = vpop.eup %2329  ;;  %v1356_v20 = vmax.f32 %v1286_v25, 1e-16 }
 0x226   :  { %2177 = vmatprep.subr.msk.bf16.mxu0 %vm110_vm0, %v1451_v42  ;;  %v1417_v28 = vmul.f32 %v2330_v58, %v3006_v4  ;;  %v2332_v15 = vpop.eup %2331  ;;  %v3735_v58 = vld [vmem:[#allocation32_spill] sm:$0xff] }
 0x227   :  { %2341 = vrsqrt.f32 %v1371_v19  ;;  %2075 = vmatpush3.bf16.xpose.msra.mxu0 %v1485_v47  ;;  %v1432_v3 = vmul.f32 %v2332_v15, %v3001_v62  ;;  %v3736_v47 = vld [vmem:[#allocation35_spill] sm:$0xff]  ;;  %v3737_v15 = vld [vmem:[#allocation36_spill] sm:$0xff] }
 0x228   :  { %v1334_v9 = vpop.xlane.xlu0 %1333  ;;  %v1289_v49 = vpop.xlane.xlu1 %1288  ;;  %2343 = vrsqrt.f32 %v1356_v20  ;;  %v1444_v41 = vpack.c.bf16 %v1417_v28, %v1416_v27 }
 0x229   :  { %v1357_v31 = vmax.f32 %v1289_v49, 1e-16  ;;  %v2334_v39 = vpop.eup %2333  ;;  %v1372_v55 = vmax.f32 %v1334_v9, 1e-16 }
 0x22a   :  { %v1433_v44 = vmul.f32 %v2334_v39, %v3020_v2  ;;  %v2336_v4 = vpop.eup %2335  ;;  %v1488_v36 = vsel %vm110_vm0, %v1444_v41, 0  ;;  %v2412_v39 = vmov -inf   ;;  %v760_v41 = vld [vmem:[%s3619_s2] ss:$2 sm:$0x3] }
 0x22b   :  { %2345 = vrsqrt.f32 %v1357_v31  ;;  %v1418_v63 = vmul.f32 %v2336_v4, %v3727_v34  ;;  %172 = vst.msk [vmem:[#allocation3] sm:$0xff] %vm171_vm2, %v2412_v39  ;;  %173 = vst.msk [vmem:[#allocation3 + $0x8] sm:$0xff] %vm171_vm2, %v2412_v39  ;;  %v1695_v39 = vstv %s3269_s9  ;;  %s3395_s9 = sld [smem:[#allocation5 + $0xf]] }
 0x22c   :  { %v1292_v14 = vpop.xlane.xlu0 %1291  ;;  %v1337_v29 = vpop.xlane.xlu1 %1336  ;;  %v1452_v60 = vpack.c.bf16 %v1433_v44, %v1432_v3  ;;  %2347 = vrsqrt.f32 %v1372_v55  ;;  %v762_v55 = vlaneseq }
 0x22d   :  { %v1373_v53 = vmax.f32 %v1337_v29, 1e-16  ;;  %v2338_v13 = vpop.eup %2337  ;;  %v1358_v45 = vmax.f32 %v1292_v14, 1e-16 }
 0x22e   :  { %2178 = vmatprep.subr.msk.bf16.mxu0 %vm110_vm0, %v1452_v60  ;;  %v1419_v50 = vmul.f32 %v2338_v13, %v3726_v17  ;;  %v2340_v57 = vpop.eup %2339  ;;  %v763_v3 = vshrl.u32 %v762_v55, 7  ;;  %v1962_v17 = vld [vmem:[%s3619_s2 + $0x1] ss:$2 sm:$0x3]  ;;  %s3230_s2 = sld [smem:[#allocation5 + $0x3]]  ;;  %v1707_v55 = vstv %s3271_s13  ;;  %s3392_s13 = sld [smem:[#allocation9 + $0x9]] }
 0x22f   :  { %2349 = vrsqrt.f32 %v1373_v53  ;;  %2077 = vmatpush3.bf16.xpose.msra.mxu0 %v1488_v36  ;;  %v1434_v26 = vmul.f32 %v2340_v57, %v3728_v37 }
 0x230   :  { %v1340_v62 = vpop.xlane.xlu0 %1339  ;;  %v1295_v2 = vpop.xlane.xlu1 %1294  ;;  %2351 = vrsqrt.f32 %v1358_v45  ;;  %v1445_v51 = vpack.c.bf16 %v1419_v50, %v1418_v63  ;;  %v764_v44 = vsub.s32 0, %v763_v3  ;;  %v768_v14 = vsub.s32 1, %v763_v3 }
 0x231   :  { %v1374_v10 = vmax.f32 %v1340_v62, 1e-16  ;;  %v1359_v5 = vmax.f32 %v1295_v2, 1e-16  ;;  %v2342_v16 = vpop.eup %2341  ;;  %3756 = sst [smem:[#allocation55_spill]] %s3395_s9 }
 0x232   :  { %v1435_v7 = vmul.f32 %v2342_v16, %v3729_v30  ;;  %v2344_v1 = vpop.eup %2343  ;;  %v1491_v48 = vsel %vm110_vm0, %v1445_v51, 0  ;;  %v765_v29 = vrot.slane %v760_v41, %v764_v44  ;;  %v769_v4 = vrot.slane %v760_v41, %v768_v14  ;;  %v867_v37 = vld [vmem:[#allocation3] sm:$0xff] }
 0x233   :  { %2353 = vrsqrt.f32 %v1359_v5  ;;  %v1420_v33 = vmul.f32 %v2344_v1, %v3731_v54  ;;  %v1463_v50 = vrot.slane %v1962_v17, %v764_v44  ;;  %v1467_v57 = vrot.slane %v1962_v17, %v768_v14 }
 0x234   :  { %v1343_v61 = vpop.xlane.xlu1 %1342  ;;  %2355 = vrsqrt.f32 %v1374_v10  ;;  %v1453_v46 = vpack.c.bf16 %v1435_v7, %v1434_v26  ;;  %v1579_v7 = vstv %s3224_s19  ;;  %v1595_v51 = vstv %s3226_s0  ;;  %3755 = sst [smem:[#allocation54_spill]] %s3392_s13 }
 0x235   :  { %v1375_v21 = vmax.f32 %v1343_v61, 1e-16  ;;  %v2346_v32 = vpop.eup %2345  ;;  %v1611_v61 = vstv %s3228_s20  ;;  %v1627_v1 = vstv %s3230_s2  ;;  %v1669_v17 = vstv %s3296_s1 }
 0x236   :  { %2179 = vmatprep.subr.msk.bf16.mxu0 %vm110_vm0, %v1453_v46  ;;  %v1421_v0 = vmul.f32 %v2346_v32, %v3730_v40  ;;  %v2348_v11 = vpop.eup %2347  ;;  %v1599_v46 = vstv %s3234_s22  ;;  %v1615_v32 = vstv %s3236_s23 }
 0x237   :  { %2357 = vrsqrt.f32 %v1375_v21  ;;  %2079 = vmatpush3.bf16.xpose.msra.mxu0 %v1491_v48  ;;  %v1436_v59 = vmul.f32 %v2348_v11, %v3732_v35  ;;  %v1583_v21 = vstv %s3232_s21  ;;  %v1643_v48 = vstv %s3238_s24  ;;  %s3328_s24 = sld [smem:[#allocation5 + $0xb]] }
 0x238   :  { %v1446_v23 = vpack.c.bf16 %v1421_v0, %v1420_v33  ;;  %v1659_v35 = vstv %s3243_s8  ;;  %s3334_s8 = sld [smem:[#allocation7 + $0xa]] }
 0x239   :  { %v2350_v56 = vpop.eup %2349 }
 0x23a   :  { %v1437_v43 = vmul.f32 %v2350_v56, %v3733_v38  ;;  %v2352_v8 = vpop.eup %2351  ;;  %v1494_v6 = vsel %vm110_vm0, %v1446_v23, 0  ;;  %v1631_v56 = vstv %s3240_s25  ;;  %s3369_s25 = sld [smem:[#allocation9 + $0x8]] }
 0x23b   :  { %v1422_v20 = vmul.f32 %v2352_v8, %v3735_v58  ;;  %v1576_v58 = vstv %s3627_s10  ;;  %s3381_s10 = sld [smem:[#allocation7 + $0xd]] }
 0x23c   :  { %v1454_v24 = vpack.c.bf16 %v1437_v43, %v1436_v59  ;;  %v1675_v59 = vstv %s3245_s7  ;;  %s3379_s7 = sld [smem:[#allocation7 + $0xc]] }
 0x23d   :  { %v2354_v12 = vpop.eup %2353  ;;  %3751 = sst [smem:[#allocation50_spill]] %s3328_s24 }
 0x23e   :  { %v2356_v25 = vpop.eup %2355  ;;  %2180 = vmatprep.subr.msk.bf16.mxu0 %vm110_vm0, %v1454_v24  ;;  %v1423_v19 = vmul.f32 %v2354_v12, %v3734_v18  ;;  %v1589_v24 = vstv %s3247_s26  ;;  %v1647_v12 = vstv %s3249_s27  ;;  %s3350_s26 = sld [smem:[#allocation9 + $0x7]]  ;;  %s3365_s27 = sld [smem:[#allocation5 + $0xe]] }
 0x23f   :  { %2081 = vmatpush3.bf16.xpose.msra.mxu0 %v1494_v6  ;;  %v1438_v28 = vmul.f32 %v2356_v25, %v3736_v47  ;;  %v1691_v25 = vstv %s3251_s28  ;;  %v1663_v47 = vstv %s3259_s29  ;;  %s3363_s28 = sld [smem:[#allocation7 + $0xb]] }
 0x240   :  { %v1447_v49 = vpack.c.bf16 %v1423_v19, %v1422_v20  ;;  %v1605_v20 = vstv %s3255_s5 }
 0x241   :  { %v2358_v42 = vpop.eup %2357 }
 0x242   :  { %v1439_v9 = vmul.f32 %v2358_v42, %v3737_v15  ;;  %v1497_v27 = vsel %vm110_vm0, %v1447_v49, 0  ;;  %v1679_v15 = vstv %s3263_s12  ;;  %3754 = sst [smem:[#allocation53_spill]] %s3379_s7 }
 0x244   :  { %v1455_v31 = vpack.c.bf16 %v1439_v9, %v1438_v28 }
 0x245   :  { %3753 = sst [smem:[#allocation52_spill]] %s3363_s28 }
 0x246   :  { %2181 = vmatprep.subr.msk.bf16.mxu0 %vm110_vm0, %v1455_v31 }
 0x247   :  { %2083 = vmatpush3.bf16.xpose.msra.mxu0 %v1497_v27  ;;  %v1621_v27 = vstv %s3261_s30 }
 0x24e   :  { %2085 = vmatmul.mubr.msk.bf16.vlgmr.msra.gmra.mrb[8].mxu0 %vm110_vm0, %v1471_v22 }
 0x2e1   :  { %v857_v53 = vpop.f32.mrb[4].mxu0 }
 0x2e2   :  { %v858_v52 = vadd.f32 %v857_v53, %v765_v29  ;;  %v859_v60 = vpop.f32.mrb[5].mxu0  ;;  %v1653_v53 = vstv %s3290_s15 }
 0x2e3   :  { %v860_v22 = vadd.f32 %v859_v60, %v769_v4  ;;  %v861_v13 = vpop.f32.mrb[6].mxu0  ;;  %v1637_v4 = vstv %s3275_s14  ;;  %s3409_s14 = sld [smem:[#allocation7 + $0xe]] }
 0x2e4   :  { %v862_v45 = vpop.f32.mrb[7].mxu0 }
 0x2e5   :  { %v864_v36 = vmax.f32 %v858_v52, %v860_v22  ;;  %v1723_v52 = vstv %s3294_s16  ;;  %s3405_s16 = sld [smem:[#allocation9 + $0xa]] }
 0x2e7   :  { %865 = vmax.xlane.f32.xlu0 %v864_v36 }
 0x2e9   :  { %3758 = sst [smem:[#allocation57_spill]] %s3409_s14 }
 0x2ea   :  { %s3787_s15 = sld [smem:[#allocation57_spill]] }
 0x2eb   :  { %3757 = sst [smem:[#allocation56_spill]] %s3405_s16 }
 0x321   :  { %v1557_v62 = vpop.f32.mrb[8].mxu0 }
 0x322   :  { %v1558_v2 = vadd.f32 %v1557_v62, %v1463_v50  ;;  %v1559_v10 = vpop.f32.mrb[9].mxu0  ;;  %v1711_v50 = vstv %s3310_s6  ;;  %s3423_s6 = sld [smem:[#allocation7 + $0xf]] }
 0x323   :  { %v1560_v5 = vadd.f32 %v1559_v10, %v1467_v57  ;;  %v1561_v34 = vpop.f32.mrb[10].mxu0  ;;  %v1739_v57 = vstv %s3312_s4  ;;  %s3420_s4 = sld [smem:[#allocation9 + $0xb]] }
 0x324   :  { %v1562_v63 = vpop.f32.mrb[11].mxu0 }
 0x325   :  { %v1564_v16 = vmax.f32 %v1558_v2, %v1560_v5  ;;  %v1685_v63 = vstv %s3314_s17 }
 0x327   :  { %1565 = vmax.xlane.f32.xlu1 %v1564_v16  ;;  %v1727_v16 = vstv %s3326_s11  ;;  %s3786_s11 = sld [smem:[#allocation56_spill]] }
 0x328   :  { %3760 = sst [smem:[#allocation59_spill]] %s3423_s6 }
 0x329   :  { %3759 = sst [smem:[#allocation58_spill]] %s3420_s4 }
 0x374   :  { %v866_v26 = vpop.xlane.xlu0 %865 }
 0x375   :  { %v868_v30 = vmax.f32 %v867_v37, %v866_v26  ;;  %v1755_v37 = vstv %s3328_s24  ;;  %s3434_s24 = sld [smem:[#allocation9 + $0xc]] }
 0x377   :  { %870 = vst.msk [vmem:[#allocation3] sm:$0xff] %vm171_vm2, %v868_v30 }
 0x37b   :  { %3761 = sst [smem:[#allocation60_spill]] %s3434_s24 }
 0x37e   :  { %v3273_v40 = vld [vmem:[#allocation3] sm:$0xff] }
 0x37f   :  { %v1580_v0 = vmul.f32 %v1579_v7, %v3273_v40  ;;  %v1596_v11 = vmul.f32 %v1595_v51, %v3273_v40  ;;  %v1612_v54 = vmul.f32 %v1611_v61, %v3273_v40  ;;  %v1628_v33 = vmul.f32 %v1627_v1, %v3273_v40 }
 0x380   :  { %v1644_v8 = vmul.f32 %v1643_v48, %v3273_v40  ;;  %v1660_v42 = vmul.f32 %v1659_v35, %v3273_v40  ;;  %v1676_v28 = vmul.f32 %v1675_v59, %v3273_v40  ;;  %v1692_v3 = vmul.f32 %v1691_v25, %v3273_v40 }
 0x381   :  { %v1584_v38 = vadd.f32 %v1583_v21, %v1580_v0  ;;  %v1600_v43 = vadd.f32 %v1599_v46, %v1596_v11  ;;  %v1616_v23 = vadd.f32 %v1615_v32, %v1612_v54  ;;  %v1632_v19 = vadd.f32 %v1631_v56, %v1628_v33 }
 0x382   :  { %v1648_v31 = vadd.f32 %v1647_v12, %v1644_v8  ;;  %v1664_v29 = vadd.f32 %v1663_v47, %v1660_v42  ;;  %v1680_v60 = vadd.f32 %v1679_v15, %v1676_v28  ;;  %v1708_v36 = vmul.f32 %v1707_v55, %v3273_v40 }
 0x383   :  { %v1586_v6 = vmax.f32 %v1584_v38, 0.0  ;;  %v1602_v18 = vmax.f32 %v1600_v43, 0.0  ;;  %v1618_v49 = vmax.f32 %v1616_v23, 0.0  ;;  %v1634_v14 = vmax.f32 %v1632_v19, 0.0 }
 0x384   :  { %v1650_v45 = vmax.f32 %v1648_v31, 0.0  ;;  %v1696_v62 = vadd.f32 %v1695_v39, %v1692_v3  ;;  %v1666_v5 = vmax.f32 %v1664_v29, 0.0  ;;  %v1724_v34 = vmul.f32 %v1723_v52, %v3273_v40 }
 0x385   :  { %v1590_v9 = vmul.f32 %v1589_v24, %v1586_v6  ;;  %v1606_v41 = vmul.f32 %v1605_v20, %v1602_v18  ;;  %v1622_v13 = vmul.f32 %v1621_v27, %v1618_v49  ;;  %v1638_v10 = vmul.f32 %v1637_v4, %v1634_v14 }
 0x386   :  { %v1682_v26 = vmax.f32 %v1680_v60, 0.0  ;;  %v1654_v0 = vmul.f32 %v1653_v53, %v1650_v45  ;;  %v1712_v11 = vadd.f32 %v1711_v50, %v1708_v36  ;;  %v1740_v54 = vmul.f32 %v1739_v57, %v3273_v40 }
 0x387   :  { %v1592_v44 = vadd.f32 %v1590_v9, %v1576_v58  ;;  %v1743_v33 = vstv %s3334_s8  ;;  %v1771_v38 = vstv %s3343_s18  ;;  %v1787_v43 = vstv %s3345_s3  ;;  %s3445_s18 = sld [smem:[#allocation9 + $0xd]] }
 0x388   :  { %v1698_v23 = vmax.f32 %v1696_v62, 0.0  ;;  %v1670_v6 = vmul.f32 %v1669_v17, %v1666_v5  ;;  %v1728_v18 = vadd.f32 %v1727_v16, %v1724_v34  ;;  %v1756_v19 = vmul.f32 %v1755_v37, %v3273_v40 }
 0x389   :  { %v1608_v22 = vadd.f32 %v1606_v41, %v1592_v44  ;;  %v1701_v42 = vstv %s3350_s26  ;;  %v1759_v28 = vstv %s3363_s28  ;;  %v1803_v9 = vstv %s3365_s27  ;;  %s3457_s28 = sld [smem:[#allocation9 + $0xe]] }
 0x38a   :  { %v1686_v49 = vmul.f32 %v1685_v63, %v1682_v26  ;;  %v1714_v3 = vmax.f32 %v1712_v11, 0.0  ;;  %v1744_v44 = vadd.f32 %v1743_v33, %v1740_v54  ;;  %v1772_v41 = vmul.f32 %v1771_v38, %v3273_v40 }
 0x38b   :  { %v1624_v2 = vadd.f32 %v1622_v13, %v1608_v22  ;;  %v1717_v14 = vstv %s3369_s25  ;;  %v1775_v29 = vstv %s3379_s7  ;;  %v1791_v60 = vstv %s3381_s10  ;;  %s3468_s7 = sld [smem:[#allocation9 + $0xf]] }
 0x38c   :  { %v1788_v22 = vmul.f32 %v1787_v43, %v3273_v40  ;;  %v1702_v45 = vmul.f32 %v1701_v42, %v1698_v23  ;;  %v1730_v36 = vmax.f32 %v1728_v18, 0.0  ;;  %v1760_v62 = vadd.f32 %v1759_v28, %v1756_v19 }
 0x38d   :  { %v1640_v30 = vadd.f32 %v1638_v10, %v1624_v2  ;;  %v1733_v2 = vstv %s3392_s13  ;;  %3762 = sst [smem:[#allocation61_spill]] %s3445_s18  ;;  %v3673_v10 = vstv %s3395_s9  ;;  %v1804_v5 = vmul.f32 %v1803_v9, %v3273_v40  ;;  %s3772_s13 = sld [smem:[#allocation65_spill]] }
 0x38e   :  { %v1718_v26 = vmul.f32 %v1717_v14, %v1714_v3  ;;  %v3674_v11 = vstv %s3405_s16  ;;  %v3675_v54 = vstv %s3409_s14  ;;  %v1792_v23 = vadd.f32 %v1791_v60, %v1788_v22  ;;  %s3785_s14 = sld [smem:[#allocation55_spill]] }
 0x38f   :  { %v1656_v8 = vadd.f32 %v1654_v0, %v1640_v30  ;;  %v1746_v30 = vmax.f32 %v1744_v44, 0.0  ;;  %v1776_v0 = vadd.f32 %v1775_v29, %v1772_v41  ;;  %3763 = sst [smem:[#allocation62_spill]] %s3457_s28  ;;  %v1762_v18 = vmax.f32 %v1760_v62, 0.0 }
 0x390   :  { %v1820_v19 = vmul.f32 %v3673_v10, %v3273_v40  ;;  %v1808_v22 = vadd.f32 %v3675_v54, %v1804_v5  ;;  %v1794_v40 = vmax.f32 %v1792_v23, 0.0 }
 0x391   :  { %v1672_v31 = vadd.f32 %v1670_v6, %v1656_v8  ;;  %v1734_v6 = vmul.f32 %v1733_v2, %v1730_v36  ;;  %3764 = sst [smem:[#allocation63_spill]] %s3468_s7  ;;  %v1750_v44 = vmul.f32 %v3674_v11, %v1746_v30  ;;  %v1778_v41 = vmax.f32 %v1776_v0, 0.0 }
 0x392   :  { %v1829_v5 = vstv %s3468_s7 }
 0x393   :  { %v1688_v13 = vadd.f32 %v1686_v49, %v1672_v31  ;;  %v1765_v49 = vstv %s3420_s4  ;;  %v1823_v31 = vstv %s3423_s6 }
 0x394   :  { %v1766_v36 = vmul.f32 %v1765_v49, %v1762_v18  ;;  %v1824_v62 = vadd.f32 %v1823_v31, %v1820_v19 }
 0x395   :  { %v1704_v34 = vadd.f32 %v1702_v45, %v1688_v13  ;;  %v1781_v13 = vstv %s3434_s24 }
 0x396   :  { %v1782_v10 = vmul.f32 %v1781_v13, %v1778_v41  ;;  %v1826_v11 = vmax.f32 %v1824_v62, 0.0  ;;  %v1567_v41 = vld [vmem:[#allocation3 + $0x8] sm:$0xff] }
 0x397   :  { %v1720_v8 = vadd.f32 %v1718_v26, %v1704_v34  ;;  %v1797_v34 = vstv %s3445_s18 }
 0x398   :  { %v1798_v0 = vmul.f32 %v1797_v34, %v1794_v40  ;;  %v1830_v23 = vmul.f32 %v1829_v5, %v1826_v11 }
 0x399   :  { %v1736_v3 = vadd.f32 %v1734_v6, %v1720_v8  ;;  %v1810_v8 = vmax.f32 %v1808_v22, 0.0  ;;  %v1813_v6 = vstv %s3457_s28 }
 0x39b   :  { %v1752_v45 = vadd.f32 %v1750_v44, %v1736_v3  ;;  %v1814_v3 = vmul.f32 %v1813_v6, %v1810_v8 }
 0x39d   :  { %v1768_v26 = vadd.f32 %v1766_v36, %v1752_v45 }
 0x39f   :  { %v1784_v30 = vadd.f32 %v1782_v10, %v1768_v26 }
 0x3a1   :  { %v1800_v54 = vadd.f32 %v1798_v0, %v1784_v30 }
 0x3a3   :  { %v1816_v18 = vadd.f32 %v1814_v3, %v1800_v54 }
 0x3a5   :  { %v1832_v19 = vadd.f32 %v1830_v23, %v1816_v18 }
 0x3a7   :  { %v2009_v44 = vmul.f32 -1.442695, %v1832_v19 }
 0x3a9   :  { %2359 = vpow2.f32 %v2009_v44 }
 0x3b3   :  { %v2360_v10 = vpop.eup %2359 }
 0x3b4   :  { %v1840_v22 = vadd.f32 1.0, %v2360_v10  ;;  %v1566_v45 = vpop.xlane.xlu1 %1565 }
 0x3b5   :  { %v1568_v36 = vmax.f32 %v1567_v41, %v1566_v45 }
 0x3b6   :  { %2361 = vrcp.f32 %v1840_v22 }
 0x3b7   :  { %1569 = vst.msk [vmem:[#allocation3 + $0x8] sm:$0xff] %vm171_vm2, %v1568_v36 }
 0x3be   :  { %v3491_v11 = vld [vmem:[#allocation3 + $0x8] sm:$0xff] }
 0x3bf   :  { %v1581_v40 = vmul.f32 %v1579_v7, %v3491_v11  ;;  %v1597_v62 = vmul.f32 %v1595_v51, %v3491_v11  ;;  %v1613_v26 = vmul.f32 %v1611_v61, %v3491_v11  ;;  %v1629_v8 = vmul.f32 %v1627_v1, %v3491_v11 }
 0x3c0   :  { %v2362_v54 = vpop.eup %2361  ;;  %v1645_v61 = vmul.f32 %v1643_v48, %v3491_v11  ;;  %v1661_v18 = vmul.f32 %v1659_v35, %v3491_v11  ;;  %v1693_v23 = vmul.f32 %v1691_v25, %v3491_v11 }
 0x3c1   :  { %1846 = vst.msk [vmem:[%s3772_s13] sm:$0xff] %vm171_vm2, %v2362_v54  ;;  %v1585_v30 = vadd.f32 %v1583_v21, %v1581_v40  ;;  %v1601_v7 = vadd.f32 %v1599_v46, %v1597_v62  ;;  %v1617_v51 = vadd.f32 %v1615_v32, %v1613_v26  ;;  %v1633_v3 = vadd.f32 %v1631_v56, %v1629_v8 }
 0x3c2   :  { %v1677_v21 = vmul.f32 %v1675_v59, %v3491_v11  ;;  %v1649_v48 = vadd.f32 %v1647_v12, %v1645_v61  ;;  %v1757_v40 = vmul.f32 %v1755_v37, %v3491_v11  ;;  %v1773_v26 = vmul.f32 %v1771_v38, %v3491_v11 }
 0x3c3   :  { %v1587_v0 = vmax.f32 %v1585_v30, 0.0  ;;  %v1603_v1 = vmax.f32 %v1601_v7, 0.0  ;;  %v1619_v32 = vmax.f32 %v1617_v51, 0.0  ;;  %v1635_v59 = vmax.f32 %v1633_v3, 0.0 }
 0x3c4   :  { %v1681_v19 = vadd.f32 %v1679_v15, %v1677_v21  ;;  %v1651_v25 = vmax.f32 %v1649_v48, 0.0  ;;  %v1725_v15 = vmul.f32 %v1723_v52, %v3491_v11  ;;  %v1805_v30 = vmul.f32 %v1803_v9, %v3491_v11 }
 0x3c5   :  { %v1591_v46 = vmul.f32 %v1589_v24, %v1587_v0  ;;  %v1607_v35 = vmul.f32 %v1605_v20, %v1603_v1  ;;  %v1665_v24 = vadd.f32 %v1663_v47, %v1661_v18  ;;  %v1623_v12 = vmul.f32 %v1621_v27, %v1619_v32 }
 0x3c6   :  { %v1697_v20 = vadd.f32 %v1695_v39, %v1693_v23  ;;  %v1639_v41 = vmul.f32 %v1637_v4, %v1635_v59  ;;  %v1683_v27 = vmax.f32 %v1681_v19, 0.0  ;;  %v1655_v45 = vmul.f32 %v1653_v53, %v1651_v25 }
 0x3c7   :  { %v1593_v56 = vadd.f32 %v1591_v46, %v1576_v58  ;;  %v1709_v58 = vmul.f32 %v1707_v55, %v3491_v11  ;;  %v1667_v47 = vmax.f32 %v1665_v24, 0.0  ;;  %v1741_v39 = vmul.f32 %v1739_v57, %v3491_v11 }
 0x3c8   :  { %v1699_v4 = vmax.f32 %v1697_v20, 0.0  ;;  %v1729_v52 = vadd.f32 %v1727_v16, %v1725_v15  ;;  %v1687_v53 = vmul.f32 %v1685_v63, %v1683_v27  ;;  %v1761_v63 = vadd.f32 %v1759_v28, %v1757_v40 }
 0x3c9   :  { %v1609_v44 = vadd.f32 %v1607_v35, %v1593_v56  ;;  %v1713_v55 = vadd.f32 %v1711_v50, %v1709_v58  ;;  %v1671_v54 = vmul.f32 %v1669_v17, %v1667_v47  ;;  %v1745_v57 = vadd.f32 %v1743_v33, %v1741_v39 }
 0x3ca   :  { %v1789_v17 = vmul.f32 %v1787_v43, %v3491_v11  ;;  %v1703_v8 = vmul.f32 %v1701_v42, %v1699_v4  ;;  %v1731_v37 = vmax.f32 %v1729_v52, 0.0  ;;  %v1777_v43 = vadd.f32 %v1775_v29, %v1773_v26 }
 0x3cb   :  { %v1625_v10 = vadd.f32 %v1623_v12, %v1609_v44  ;;  %v1715_v62 = vmax.f32 %v1713_v55, 0.0  ;;  %v1747_v38 = vmax.f32 %v1745_v57, 0.0  ;;  %v1763_v0 = vmax.f32 %v1761_v63, 0.0 }
 0x3cc   :  { %v1793_v51 = vadd.f32 %v1791_v60, %v1789_v17  ;;  %v1735_v42 = vmul.f32 %v1733_v2, %v1731_v37  ;;  %v3792_v28 = vstv %s3785_s14  ;;  %v3794_v3 = vstv %s3786_s11 }
 0x3cd   :  { %v1641_v22 = vadd.f32 %v1639_v41, %v1625_v10  ;;  %v1719_v7 = vmul.f32 %v1717_v14, %v1715_v62  ;;  %v1821_v1 = vmul.f32 %v3792_v28, %v3491_v11  ;;  %v1751_v18 = vmul.f32 %v3794_v3, %v1747_v38 }
 0x3ce   :  { %v1779_v14 = vmax.f32 %v1777_v43, 0.0  ;;  %v3796_v21 = vstv %s3787_s15  ;;  %v1767_v29 = vmul.f32 %v1765_v49, %v1763_v0  ;;  %v1795_v60 = vmax.f32 %v1793_v51, 0.0 }
 0x3cf   :  { %v1657_v36 = vadd.f32 %v1655_v45, %v1641_v22  ;;  %v1809_v46 = vadd.f32 %v3796_v21, %v1805_v30  ;;  %v1825_v48 = vadd.f32 %v1823_v31, %v1821_v1 }
 0x3d0   :  { %v1783_v2 = vmul.f32 %v1781_v13, %v1779_v14  ;;  %v1799_v11 = vmul.f32 %v1797_v34, %v1795_v60 }
 0x3d1   :  { %v1673_v50 = vadd.f32 %v1671_v54, %v1657_v36  ;;  %v1811_v56 = vmax.f32 %v1809_v46, 0.0  ;;  %v1827_v59 = vmax.f32 %v1825_v48, 0.0 }
 0x3d3   :  { %v1689_v16 = vadd.f32 %v1687_v53, %v1673_v50  ;;  %v1815_v19 = vmul.f32 %v1813_v6, %v1811_v56  ;;  %v1831_v12 = vmul.f32 %v1829_v5, %v1827_v59 }
 0x3d5   :  { %v1705_v33 = vadd.f32 %v1703_v8, %v1689_v16 }
 0x3d7   :  { %v1721_v61 = vadd.f32 %v1719_v7, %v1705_v33 }
 0x3d9   :  { %v1737_v9 = vadd.f32 %v1735_v42, %v1721_v61 }
 0x3db   :  { %v1753_v32 = vadd.f32 %v1751_v18, %v1737_v9 }
 0x3dd   :  { %v1769_v23 = vadd.f32 %v1767_v29, %v1753_v32 }
 0x3df   :  { %v1785_v35 = vadd.f32 %v1783_v2, %v1769_v23 }
 0x3e1   :  { %v1801_v24 = vadd.f32 %v1799_v11, %v1785_v35 }
 0x3e3   :  { %v1817_v44 = vadd.f32 %v1815_v19, %v1801_v24 }
 0x3e5   :  { %v1833_v25 = vadd.f32 %v1831_v12, %v1817_v44 }
 0x3e7   :  { %v2010_v58 = vmul.f32 -1.442695, %v1833_v25 }
 0x3e9   :  { %2363 = vpow2.f32 %v2010_v58 }
 0x3f3   :  { %v2364_v49 = vpop.eup %2363 }
 0x3f4   :  { %v1841_v20 = vadd.f32 1.0, %v2364_v49 }
 0x3f6   :  { %2365 = vrcp.f32 %v1841_v20 }
 0x400   :  { %v2366_v31 = vpop.eup %2365 }
 0x401   :  { %1847 = vst.msk [vmem:[%s3772_s13 + $0x8] sm:$0xff] %vm171_vm2, %v2366_v31 }
 0x402   :  { %1852 = vsyncpa [#allocation6], 1 }
 0x403   :  { %1853 = vsyncpa [#allocation8], 1 }

</bundles_post_ra>
